<compile_context>
chip_gen: v6e
topology: v6e:2x2x1
jax: 0.10.0
libtpu: 0.0.40
codegen_flags: <defaults>
</compile_context>

<pallas_src>
import math

import jax
import jax.numpy as jnp
from jax import lax
from jax.experimental import pallas as pl
from jax.experimental.pallas import tpu as pltpu

# ---- small, module-consistent config -------------------------------------
EMBED_DIM = 32
FF_DIM = 64
NUM_HEADS = 4
N_AGENT = 8            # tgt_len == src_len == n_agent
BATCH = 2
HEAD_DIM = EMBED_DIM // NUM_HEADS
LN_EPS = 1e-5          # torch.nn.LayerNorm default

LANE = 128
# Column-block index of each weight segment in the packed (D, 8*128) slab.
(SEG_WQ, SEG_WK, SEG_WV, SEG_WRA, SEG_WRB, SEG_WOUT, SEG_WF1, SEG_HREP) = range(8)
N_SEG = 8

# Rows of the packed per-channel vector slab (each row zero-padded to 128 lanes).
(VEC_BQ, VEC_BK, VEC_BV, VEC_BRA, VEC_BRB, VEC_BOUT,
 VEC_G1, VEC_BE1, VEC_BF1, VEC_BF2, VEC_G2, VEC_BE2) = range(12)
VEC_ROWS = 16  # multiple of 8 sublanes


def _layer_norm(x, gamma, beta, eps=LN_EPS):
    mu = jnp.mean(x, axis=-1, keepdims=True)
    var = jnp.mean((x - mu) ** 2, axis=-1, keepdims=True)
    return (x - mu) * lax.rsqrt(var + eps) * gamma + beta


# ---- the Pallas kernel (whole problem in one grid step) --------------------
def _make_kernel(T, B, D, F):
    def kernel(x_ref, rel_ref, wa_ref, wf2_ref, g_ref, vec_ref, o_ref):
        f32 = jnp.float32
        dot = lambda a, b: jnp.dot(a, b, preferred_element_type=f32)

        x = x_ref[...]          # (T*B, D)    rows (t, b)
        rel = rel_ref[...]      # (T*T*B, D)  rows (tgt=j, src=i, b)  [native order]
        g = g_ref[...]          # (T*T*B, T*B) 0/1 key/value row-replication matrix
        w_f2 = wf2_ref[...]     # (F, D)

        # --- 128-lane-aligned weight / bias slices ------------------------
        def seg(idx, width=D):
            return wa_ref[:, idx * LANE: idx * LANE + width]

        def vec(row, width=D):
            return vec_ref[row: row + 1, 0:width]

        w_q, w_k, w_v = seg(SEG_WQ), seg(SEG_WK), seg(SEG_WV)
        w_ra, w_rb, w_out = seg(SEG_WRA), seg(SEG_WRB), seg(SEG_WOUT)
        w_f1 = seg(SEG_WF1, F)
        head_rep = seg(SEG_HREP)                 # (D, D), 1/head_dim folded in

        b_q, b_k, b_v = vec(VEC_BQ), vec(VEC_BK), vec(VEC_BV)
        b_ra, b_rb, b_out = vec(VEC_BRA), vec(VEC_BRB), vec(VEC_BOUT)
        g1, be1 = vec(VEC_G1), vec(VEC_BE1)
        b_f1 = vec(VEC_BF1, F)
        b_f2, g2, be2 = vec(VEC_BF2), vec(VEC_G2), vec(VEC_BE2)

        # --- projections (each output lane-aligned, one tiny MXU matmul) ---
        q = dot(x, w_q) + b_q                    # (T*B, D)    rows (i, b)
        k = dot(x, w_k) + b_k
        v = dot(x, w_v) + b_v
        ra = dot(rel, w_ra) + b_ra               # (T*T*B, D)  rows (j, i, b)
        rb = dot(rel, w_rb) + b_rb

        # Replicate k/v over the query index: row (j*T*B + i*B + b) <- row (j*B + b).
        # One tiny MXU matmul keeps everything sublane-dense (no 4-D broadcasts).
        k3 = dot(g, k).reshape(T, T * B, D)      # (j, (i,b), d)
        v3 = dot(g, v).reshape(T, T * B, D)

        ra3 = ra.reshape(T, T * B, D)            # ra3[j, i*B+b] = proj_a(rel[tgt=j, src=i, b])
        rb3 = rb.reshape(T, T * B, D)
        q3 = lax.broadcast_in_dim(q, (T, T * B, D), (1, 2))   # broadcast over key axis j

        # --- relation attention scores, replicated to all D lanes per head ---
        # s[j, ib, d] = (1/hd) * sum_{n in head(d)} (q+ra)[j,ib,n] * (k+rb)[j,ib,n]
        prod = (q3 + ra3) * (k3 + rb3)                          # (T, T*B, D)
        s = dot(prod.reshape(T * T * B, D), head_rep).reshape(T, T * B, D)

        # --- softmax over the key index j (leading axis -> cross-vreg VPU ops) ---
        m = jnp.max(s, axis=0, keepdims=True)
        e = jnp.exp(s - m)
        denom = jnp.sum(e, axis=0, keepdims=True)
        p = e / denom                                            # exact (review note)

        # --- P @ V: elementwise mul + leading-axis reduce (T=8, cheap) ------
        attn = jnp.sum(p * v3, axis=0)                           # (T*B, D) rows (i, b)

        # --- out projection (Conv1D) + residual + LayerNorm -----------------
        attn = dot(attn, w_out) + b_out
        # dropout(p=0.1) is identity in eval mode.
        x1 = _layer_norm(x + attn, g1, be1)

        # --- FFN: Conv1D -> relu -> Conv1D + residual + LayerNorm -----------
        f = jnp.maximum(dot(x1, w_f1) + b_f1, 0.0)
        y = dot(f, w_f2) + b_f2
        o_ref[...] = _layer_norm(x1 + y, g2, be2)

    return kernel


# ---- wrapper ---------------------------------------------------------------
@jax.jit
def graph_transformer_layer(x, relation, params):
    """x: (T, B, D); relation: (T, S, B, D), S == T.  Returns (T, B, D)."""
    T, B, D = x.shape
    F = params["wf2"].shape[0]

    # Free metadata reshapes only (no transposes, no data movement).
    x_flat = x.reshape(T * B, D)                    # rows (t, b)
    rel_flat = relation.reshape(T * T * B, D)       # rows (tgt, src, b)

    out = pl.pallas_call(
        _make_kernel(T, B, D, F),
        out_shape=jax.ShapeDtypeStruct((T * B, D), jnp.float32),
        grid=(1,),
        in_specs=[
            pl.BlockSpec((T * B, D), lambda i: (0, 0)),
            pl.BlockSpec((T * T * B, D), lambda i: (0, 0)),
            pl.BlockSpec((D, N_SEG * LANE), lambda i: (0, 0)),
            pl.BlockSpec((F, D), lambda i: (0, 0)),
            pl.BlockSpec((T * T * B, T * B), lambda i: (0, 0)),
            pl.BlockSpec((VEC_ROWS, LANE), lambda i: (0, 0)),
        ],
        out_specs=pl.BlockSpec((T * B, D), lambda i: (0, 0)),
        compiler_params=pltpu.CompilerParams(dimension_semantics=("arbitrary",)),
    )(x_flat, rel_flat, params["w_packed"], params["wf2"],
      params["gmat"], params["vecs"])

    return out.reshape(T, B, D)                     # free metadata reshape back


# ---- parameter init / packing (matches module __init__ shapes) ------------
def init_params(key):
    std = 0.02
    D, F, hd = EMBED_DIM, FF_DIM, HEAD_DIM
    T, B = N_AGENT, BATCH
    ks = jax.random.split(key, 14)

    wqkv = jax.random.normal(ks[0], (3 * D, D), jnp.float32) * std   # torch in_proj_weight
    wrel = jax.random.normal(ks[1], (D, 2 * D), jnp.float32) * std   # Conv1D(2D, D): x @ W + b
    wout = jax.random.normal(ks[2], (D, D), jnp.float32) * std       # Conv1D(D, D)
    wf1 = jax.random.normal(ks[3], (D, F), jnp.float32) * std        # Conv1D(F, D)
    wf2 = jax.random.normal(ks[4], (F, D), jnp.float32) * std        # Conv1D(D, F)

    # The module initializes all biases to 0 / LN affine to (1, 0); small random
    # values are used here instead purely to exercise every parameter path in the
    # self-test (reference and kernel share the same params, so semantics match).
    p = dict(
        wqkv_t=wqkv.T,                                                # F.linear == x @ W.T + b
        bqkv=jax.random.normal(ks[5], (3 * D,), jnp.float32) * std,
        wrel=wrel, brel=jax.random.normal(ks[6], (2 * D,), jnp.float32) * std,
        wout=wout, bout=jax.random.normal(ks[7], (D,), jnp.float32) * std,
        g1=1.0 + jax.random.normal(ks[8], (D,), jnp.float32) * std,
        be1=jax.random.normal(ks[9], (D,), jnp.float32) * std,
        wf1=wf1, bf1=jax.random.normal(ks[10], (F,), jnp.float32) * std,
        wf2=wf2, bf2=jax.random.normal(ks[11], (D,), jnp.float32) * std,
        g2=1.0 + jax.random.normal(ks[12], (D,), jnp.float32) * std,
        be2=jax.random.normal(ks[13], (D,), jnp.float32) * std,
    )

    # --- packed weight slab: every segment starts at a 128-lane boundary ----
    wq_t = p["wqkv_t"][:, 0:D]
    wk_t = p["wqkv_t"][:, D:2 * D]
    wv_t = p["wqkv_t"][:, 2 * D:3 * D]
    w_ra = wrel[:, 0:D]
    w_rb = wrel[:, D:2 * D]
    # (D, D) head block-replication constant with the module's double scaling
    # (hd**-0.5 on q+ra, then 1/sqrt(hd) on the score) folded into a single 1/hd.
    head_ids = jnp.arange(D) // hd
    head_rep = (head_ids[:, None] == head_ids[None, :]).astype(jnp.float32) / float(hd)

    slab = jnp.zeros((D, N_SEG * LANE), jnp.float32)
    for idx, w in ((SEG_WQ, wq_t), (SEG_WK, wk_t), (SEG_WV, wv_t),
                   (SEG_WRA, w_ra), (SEG_WRB, w_rb), (SEG_WOUT, wout),
                   (SEG_WF1, wf1), (SEG_HREP, head_rep)):
        slab = slab.at[:, idx * LANE: idx * LANE + w.shape[1]].set(w)
    p["w_packed"] = slab

    # --- packed bias / gamma / beta slab ------------------------------------
    vecs = jnp.zeros((VEC_ROWS, LANE), jnp.float32)
    named = ((VEC_BQ, p["bqkv"][0:D]), (VEC_BK, p["bqkv"][D:2 * D]),
             (VEC_BV, p["bqkv"][2 * D:3 * D]),
             (VEC_BRA, p["brel"][0:D]), (VEC_BRB, p["brel"][D:2 * D]),
             (VEC_BOUT, p["bout"]), (VEC_G1, p["g1"]), (VEC_BE1, p["be1"]),
             (VEC_BF1, p["bf1"]), (VEC_BF2, p["bf2"]),
             (VEC_G2, p["g2"]), (VEC_BE2, p["be2"]))
    for row, val in named:
        vecs = vecs.at[row, :val.shape[0]].set(val)
    p["vecs"] = vecs

    # --- key/value row-replication matrix: row (j*T*B + i*B + b) <- col (j*B + b) ---
    r = jnp.arange(T * T * B)
    c = jnp.arange(T * B)
    gmat = ((c[None, :] // B == r[:, None] // (T * B)) &
            (c[None, :] % B == r[:, None] % B)).astype(jnp.float32)
    p["gmat"] = gmat
    return p


# ---- pure-JAX reference (mirrors the PyTorch code path exactly) -----------
def reference_forward(x, relation, p):
    T, B, D = x.shape
    H, hd = NUM_HEADS, HEAD_DIM
    qkv = jnp.einsum('tbd,de->tbe', x, p['wqkv_t']) + p['bqkv']
    q, k, v = jnp.split(qkv, 3, axis=-1)
    q = q.reshape(T, B * H, hd)
    k = k.reshape(T, B * H, hd)
    v = v.reshape(T, B * H, hd)
    relp = jnp.einsum('tsbd,de->tsbe', relation, p['wrel']) + p['brel']
    ra, rb = jnp.split(relp, 2, axis=-1)
    ra = ra.reshape(T, T, B * H, hd).transpose(1, 0, 2, 3)
    rb = rb.reshape(T, T, B * H, hd).transpose(1, 0, 2, 3)
    qe = (q[:, None] + ra) * (hd ** -0.5)
    ke = k[None, :] + rb
    aw = jnp.einsum('ijbn,ijbn->ijb', qe, ke) / math.sqrt(hd)
    aw = jax.nn.softmax(aw, axis=1)
    attn = jnp.einsum('ijb,jbn->bin', aw, v)
    attn = attn.transpose(1, 0, 2).reshape(T, B, D)
    attn = attn @ p['wout'] + p['bout']

    def ln(z, g, be):
        mu = z.mean(-1, keepdims=True)
        var = ((z - mu) ** 2).mean(-1, keepdims=True)
        return (z - mu) / jnp.sqrt(var + LN_EPS) * g + be

    x1 = ln(x + attn, p['g1'], p['be1'])
    f = jax.nn.relu(x1 @ p['wf1'] + p['bf1'])
    y = f @ p['wf2'] + p['bf2']
    return ln(x1 + y, p['g2'], p['be2'])


if __name__ == "__main__":
    key = jax.random.PRNGKey(0)
    kx, kr, kp = jax.random.split(key, 3)
    x = jax.random.normal(kx, (N_AGENT, BATCH, EMBED_DIM), jnp.float32)
    relation = jax.random.normal(kr, (N_AGENT, N_AGENT, BATCH, EMBED_DIM), jnp.float32)
    params = init_params(kp)

    ref = reference_forward(x, relation, params)
    out = jax.block_until_ready(graph_transformer_layer(x, relation, params))
    assert out.shape == (N_AGENT, BATCH, EMBED_DIM)
    # Tolerance covers MXU f32 matmul precision differences vs. the XLA reference.
    err = float(jnp.max(jnp.abs(out - ref)))
    assert jnp.allclose(out, ref, atol=1e-3, rtol=1e-3), err
    print("KERNEL_OK")
</pallas_src>

<mosaic_0001>
module attributes {stable_mosaic.version = 11 : i64} {
  func.func @kernel(%arg0: i32, %arg1: memref<16x32xf32, #tpu.memory_space<vmem>>, %arg2: memref<128x32xf32, #tpu.memory_space<vmem>>, %arg3: memref<32x1024xf32, #tpu.memory_space<vmem>>, %arg4: memref<64x32xf32, #tpu.memory_space<vmem>>, %arg5: memref<128x16xf32, #tpu.memory_space<vmem>>, %arg6: memref<16x128xf32, #tpu.memory_space<vmem>>, %arg7: memref<16x32xf32, #tpu.memory_space<vmem>>) attributes {dimension_semantics = [#tpu.dimension_semantics<arbitrary>], iteration_bounds = array<i64: 1>, scalar_prefetch = 0 : i64, scratch_operands = 0 : i64, tpu.core_type = #tpu.core_type<tc>, window_params = [{pipeline_mode = #tpu.pipeline_mode<synchronous>, transform_indices = @transform_0, window_bounds = array<i64: 16, 32>}, {pipeline_mode = #tpu.pipeline_mode<synchronous>, transform_indices = @transform_1, window_bounds = array<i64: 128, 32>}, {pipeline_mode = #tpu.pipeline_mode<synchronous>, transform_indices = @transform_2, window_bounds = array<i64: 32, 1024>}, {pipeline_mode = #tpu.pipeline_mode<synchronous>, transform_indices = @transform_3, window_bounds = array<i64: 64, 32>}, {pipeline_mode = #tpu.pipeline_mode<synchronous>, transform_indices = @transform_4, window_bounds = array<i64: 128, 16>}, {pipeline_mode = #tpu.pipeline_mode<synchronous>, transform_indices = @transform_5, window_bounds = array<i64: 16, 128>}, {pipeline_mode = #tpu.pipeline_mode<synchronous>, transform_indices = @transform_6, window_bounds = array<i64: 16, 32>}]} {
    %c0 = arith.constant 0 : index
    %c0_0 = arith.constant 0 : index
    %0 = vector.load %arg1[%c0, %c0_0] : memref<16x32xf32, #tpu.memory_space<vmem>>, vector<16x32xf32>
    %c0_1 = arith.constant 0 : index
    %c0_2 = arith.constant 0 : index
    %1 = vector.load %arg2[%c0_1, %c0_2] : memref<128x32xf32, #tpu.memory_space<vmem>>, vector<128x32xf32>
    %c0_3 = arith.constant 0 : index
    %c0_4 = arith.constant 0 : index
    %2 = vector.load %arg5[%c0_3, %c0_4] : memref<128x16xf32, #tpu.memory_space<vmem>>, vector<128x16xf32>
    %c0_5 = arith.constant 0 : index
    %c0_6 = arith.constant 0 : index
    %3 = vector.load %arg4[%c0_5, %c0_6] : memref<64x32xf32, #tpu.memory_space<vmem>>, vector<64x32xf32>
    %c0_7 = arith.constant 0 : index
    %c0_8 = arith.constant 0 : index
    %4 = vector.load %arg3[%c0_7, %c0_8] : memref<32x1024xf32, #tpu.memory_space<vmem>>, vector<32x32xf32>
    %c0_9 = arith.constant 0 : index
    %c128 = arith.constant 128 : index
    %5 = vector.load %arg3[%c0_9, %c128] : memref<32x1024xf32, #tpu.memory_space<vmem>>, vector<32x32xf32>
    %c0_10 = arith.constant 0 : index
    %c256 = arith.constant 256 : index
    %6 = vector.load %arg3[%c0_10, %c256] : memref<32x1024xf32, #tpu.memory_space<vmem>>, vector<32x32xf32>
    %c0_11 = arith.constant 0 : index
    %c384 = arith.constant 384 : index
    %7 = vector.load %arg3[%c0_11, %c384] : memref<32x1024xf32, #tpu.memory_space<vmem>>, vector<32x32xf32>
    %c0_12 = arith.constant 0 : index
    %c512 = arith.constant 512 : index
    %8 = vector.load %arg3[%c0_12, %c512] : memref<32x1024xf32, #tpu.memory_space<vmem>>, vector<32x32xf32>
    %c0_13 = arith.constant 0 : index
    %c640 = arith.constant 640 : index
    %9 = vector.load %arg3[%c0_13, %c640] : memref<32x1024xf32, #tpu.memory_space<vmem>>, vector<32x32xf32>
    %c0_14 = arith.constant 0 : index
    %c768 = arith.constant 768 : index
    %10 = vector.load %arg3[%c0_14, %c768] : memref<32x1024xf32, #tpu.memory_space<vmem>>, vector<32x64xf32>
    %c0_15 = arith.constant 0 : index
    %c896 = arith.constant 896 : index
    %11 = vector.load %arg3[%c0_15, %c896] : memref<32x1024xf32, #tpu.memory_space<vmem>>, vector<32x32xf32>
    %c0_16 = arith.constant 0 : index
    %c0_17 = arith.constant 0 : index
    %12 = vector.load %arg6[%c0_16, %c0_17] : memref<16x128xf32, #tpu.memory_space<vmem>>, vector<1x32xf32>
    %c1 = arith.constant 1 : index
    %c0_18 = arith.constant 0 : index
    %13 = vector.load %arg6[%c1, %c0_18] : memref<16x128xf32, #tpu.memory_space<vmem>>, vector<1x32xf32>
    %c2 = arith.constant 2 : index
    %c0_19 = arith.constant 0 : index
    %14 = vector.load %arg6[%c2, %c0_19] : memref<16x128xf32, #tpu.memory_space<vmem>>, vector<1x32xf32>
    %c3 = arith.constant 3 : index
    %c0_20 = arith.constant 0 : index
    %15 = vector.load %arg6[%c3, %c0_20] : memref<16x128xf32, #tpu.memory_space<vmem>>, vector<1x32xf32>
    %c4 = arith.constant 4 : index
    %c0_21 = arith.constant 0 : index
    %16 = vector.load %arg6[%c4, %c0_21] : memref<16x128xf32, #tpu.memory_space<vmem>>, vector<1x32xf32>
    %c5 = arith.constant 5 : index
    %c0_22 = arith.constant 0 : index
    %17 = vector.load %arg6[%c5, %c0_22] : memref<16x128xf32, #tpu.memory_space<vmem>>, vector<1x32xf32>
    %c6 = arith.constant 6 : index
    %c0_23 = arith.constant 0 : index
    %18 = vector.load %arg6[%c6, %c0_23] : memref<16x128xf32, #tpu.memory_space<vmem>>, vector<1x32xf32>
    %c7 = arith.constant 7 : index
    %c0_24 = arith.constant 0 : index
    %19 = vector.load %arg6[%c7, %c0_24] : memref<16x128xf32, #tpu.memory_space<vmem>>, vector<1x32xf32>
    %c8 = arith.constant 8 : index
    %c0_25 = arith.constant 0 : index
    %20 = vector.load %arg6[%c8, %c0_25] : memref<16x128xf32, #tpu.memory_space<vmem>>, vector<1x64xf32>
    %c9 = arith.constant 9 : index
    %c0_26 = arith.constant 0 : index
    %21 = vector.load %arg6[%c9, %c0_26] : memref<16x128xf32, #tpu.memory_space<vmem>>, vector<1x32xf32>
    %c10 = arith.constant 10 : index
    %c0_27 = arith.constant 0 : index
    %22 = vector.load %arg6[%c10, %c0_27] : memref<16x128xf32, #tpu.memory_space<vmem>>, vector<1x32xf32>
    %c11 = arith.constant 11 : index
    %c0_28 = arith.constant 0 : index
    %23 = vector.load %arg6[%c11, %c0_28] : memref<16x128xf32, #tpu.memory_space<vmem>>, vector<1x32xf32>
    %cst = arith.constant dense<0.000000e+00> : vector<16x32xf32>
    %24 = tpu.matmul %0, %4, %cst {dimension_numbers = #tpu.dot_dimension_numbers<[1], [0], [0], [1], [0, 0, 1, 1], [], []>} : vector<16x32xf32>, vector<32x32xf32>, vector<16x32xf32> -> vector<16x32xf32>
    %25 = vector.broadcast %12 : vector<1x32xf32> to vector<16x32xf32>
    %26 = arith.addf %24, %25 : vector<16x32xf32>
    %cst_29 = arith.constant dense<0.000000e+00> : vector<16x32xf32>
    %27 = tpu.matmul %0, %5, %cst_29 {dimension_numbers = #tpu.dot_dimension_numbers<[1], [0], [0], [1], [0, 0, 1, 1], [], []>} : vector<16x32xf32>, vector<32x32xf32>, vector<16x32xf32> -> vector<16x32xf32>
    %28 = vector.broadcast %13 : vector<1x32xf32> to vector<16x32xf32>
    %29 = arith.addf %27, %28 : vector<16x32xf32>
    %cst_30 = arith.constant dense<0.000000e+00> : vector<16x32xf32>
    %30 = tpu.matmul %0, %6, %cst_30 {dimension_numbers = #tpu.dot_dimension_numbers<[1], [0], [0], [1], [0, 0, 1, 1], [], []>} : vector<16x32xf32>, vector<32x32xf32>, vector<16x32xf32> -> vector<16x32xf32>
    %31 = vector.broadcast %14 : vector<1x32xf32> to vector<16x32xf32>
    %32 = arith.addf %30, %31 : vector<16x32xf32>
    %cst_31 = arith.constant dense<0.000000e+00> : vector<128x32xf32>
    %33 = tpu.matmul %1, %7, %cst_31 {dimension_numbers = #tpu.dot_dimension_numbers<[1], [0], [0], [1], [0, 0, 1, 1], [], []>} : vector<128x32xf32>, vector<32x32xf32>, vector<128x32xf32> -> vector<128x32xf32>
    %34 = vector.broadcast %15 : vector<1x32xf32> to vector<128x32xf32>
    %35 = arith.addf %33, %34 : vector<128x32xf32>
    %cst_32 = arith.constant dense<0.000000e+00> : vector<128x32xf32>
    %36 = tpu.matmul %1, %8, %cst_32 {dimension_numbers = #tpu.dot_dimension_numbers<[1], [0], [0], [1], [0, 0, 1, 1], [], []>} : vector<128x32xf32>, vector<32x32xf32>, vector<128x32xf32> -> vector<128x32xf32>
    %37 = vector.broadcast %16 : vector<1x32xf32> to vector<128x32xf32>
    %38 = arith.addf %36, %37 : vector<128x32xf32>
    %cst_33 = arith.constant dense<0.000000e+00> : vector<128x32xf32>
    %39 = tpu.matmul %2, %29, %cst_33 {dimension_numbers = #tpu.dot_dimension_numbers<[1], [0], [0], [1], [0, 0, 1, 1], [], []>} : vector<128x16xf32>, vector<16x32xf32>, vector<128x32xf32> -> vector<128x32xf32>
    %40 = vector.shape_cast %39 : vector<128x32xf32> to vector<8x16x32xf32>
    %cst_34 = arith.constant dense<0.000000e+00> : vector<128x32xf32>
    %41 = tpu.matmul %2, %32, %cst_34 {dimension_numbers = #tpu.dot_dimension_numbers<[1], [0], [0], [1], [0, 0, 1, 1], [], []>} : vector<128x16xf32>, vector<16x32xf32>, vector<128x32xf32> -> vector<128x32xf32>
    %42 = vector.shape_cast %41 : vector<128x32xf32> to vector<8x16x32xf32>
    %43 = vector.shape_cast %35 : vector<128x32xf32> to vector<8x16x32xf32>
    %44 = vector.shape_cast %38 : vector<128x32xf32> to vector<8x16x32xf32>
    %45 = vector.shape_cast %26 : vector<16x32xf32> to vector<1x16x32xf32>
    %46 = vector.broadcast %45 : vector<1x16x32xf32> to vector<8x16x32xf32>
    %47 = arith.addf %46, %43 : vector<8x16x32xf32>
    %48 = arith.addf %40, %44 : vector<8x16x32xf32>
    %49 = arith.mulf %47, %48 : vector<8x16x32xf32>
    %50 = vector.shape_cast %49 : vector<8x16x32xf32> to vector<128x32xf32>
    %cst_35 = arith.constant dense<0.000000e+00> : vector<128x32xf32>
    %51 = tpu.matmul %50, %11, %cst_35 {dimension_numbers = #tpu.dot_dimension_numbers<[1], [0], [0], [1], [0, 0, 1, 1], [], []>} : vector<128x32xf32>, vector<32x32xf32>, vector<128x32xf32> -> vector<128x32xf32>
    %52 = vector.shape_cast %51 : vector<128x32xf32> to vector<8x16x32xf32>
    %cst_36 = arith.constant dense<0xFF800000> : vector<16x32xf32>
    %53 = vector.multi_reduction <maximumf>, %52, %cst_36 [0] : vector<8x16x32xf32> to vector<16x32xf32>
    %54 = vector.shape_cast %53 : vector<16x32xf32> to vector<1x16x32xf32>
    %55 = vector.broadcast %54 : vector<1x16x32xf32> to vector<8x16x32xf32>
    %56 = arith.subf %52, %55 : vector<8x16x32xf32>
    %57 = math.exp %56 : vector<8x16x32xf32>
    %cst_37 = arith.constant dense<0.000000e+00> : vector<16x32xf32>
    %58 = vector.multi_reduction <add>, %57, %cst_37 [0] : vector<8x16x32xf32> to vector<16x32xf32>
    %59 = vector.shape_cast %58 : vector<16x32xf32> to vector<1x16x32xf32>
    %60 = vector.broadcast %59 : vector<1x16x32xf32> to vector<8x16x32xf32>
    %61 = arith.divf %57, %60 : vector<8x16x32xf32>
    %62 = arith.mulf %61, %42 : vector<8x16x32xf32>
    %cst_38 = arith.constant dense<0.000000e+00> : vector<16x32xf32>
    %63 = vector.multi_reduction <add>, %62, %cst_38 [0] : vector<8x16x32xf32> to vector<16x32xf32>
    %cst_39 = arith.constant dense<0.000000e+00> : vector<16x32xf32>
    %64 = tpu.matmul %63, %9, %cst_39 {dimension_numbers = #tpu.dot_dimension_numbers<[1], [0], [0], [1], [0, 0, 1, 1], [], []>} : vector<16x32xf32>, vector<32x32xf32>, vector<16x32xf32> -> vector<16x32xf32>
    %65 = vector.broadcast %17 : vector<1x32xf32> to vector<16x32xf32>
    %66 = arith.addf %64, %65 : vector<16x32xf32>
    %67 = arith.addf %0, %66 : vector<16x32xf32>
    %cst_40 = arith.constant dense<0.000000e+00> : vector<16xf32>
    %68 = vector.multi_reduction <add>, %67, %cst_40 [1] : vector<16x32xf32> to vector<16xf32>
    %69 = vector.shape_cast %68 : vector<16xf32> to vector<16x1xf32>
    %cst_41 = arith.constant 3.200000e+01 : f32
    %70 = vector.broadcast %cst_41 : f32 to vector<16x1xf32>
    %71 = arith.divf %69, %70 : vector<16x1xf32>
    %72 = vector.broadcast %71 : vector<16x1xf32> to vector<16x32xf32>
    %73 = arith.subf %67, %72 : vector<16x32xf32>
    %74 = arith.mulf %73, %73 : vector<16x32xf32>
    %cst_42 = arith.constant dense<0.000000e+00> : vector<16xf32>
    %75 = vector.multi_reduction <add>, %74, %cst_42 [1] : vector<16x32xf32> to vector<16xf32>
    %76 = vector.shape_cast %75 : vector<16xf32> to vector<16x1xf32>
    %cst_43 = arith.constant 3.200000e+01 : f32
    %77 = vector.broadcast %cst_43 : f32 to vector<16x1xf32>
    %78 = arith.divf %76, %77 : vector<16x1xf32>
    %79 = vector.broadcast %71 : vector<16x1xf32> to vector<16x32xf32>
    %80 = arith.subf %67, %79 : vector<16x32xf32>
    %cst_44 = arith.constant 9.99999974E-6 : f32
    %81 = vector.broadcast %cst_44 : f32 to vector<16x1xf32>
    %82 = arith.addf %78, %81 : vector<16x1xf32>
    %83 = math.rsqrt %82 : vector<16x1xf32>
    %84 = vector.broadcast %83 : vector<16x1xf32> to vector<16x32xf32>
    %85 = arith.mulf %80, %84 : vector<16x32xf32>
    %86 = vector.broadcast %18 : vector<1x32xf32> to vector<16x32xf32>
    %87 = arith.mulf %85, %86 : vector<16x32xf32>
    %88 = vector.broadcast %19 : vector<1x32xf32> to vector<16x32xf32>
    %89 = arith.addf %87, %88 : vector<16x32xf32>
    %cst_45 = arith.constant dense<0.000000e+00> : vector<16x64xf32>
    %90 = tpu.matmul %89, %10, %cst_45 {dimension_numbers = #tpu.dot_dimension_numbers<[1], [0], [0], [1], [0, 0, 1, 1], [], []>} : vector<16x32xf32>, vector<32x64xf32>, vector<16x64xf32> -> vector<16x64xf32>
    %91 = vector.broadcast %20 : vector<1x64xf32> to vector<16x64xf32>
    %92 = arith.addf %90, %91 : vector<16x64xf32>
    %cst_46 = arith.constant 0.000000e+00 : f32
    %93 = vector.broadcast %cst_46 : f32 to vector<16x64xf32>
    %94 = arith.maximumf %92, %93 : vector<16x64xf32>
    %cst_47 = arith.constant dense<0.000000e+00> : vector<16x32xf32>
    %95 = tpu.matmul %94, %3, %cst_47 {dimension_numbers = #tpu.dot_dimension_numbers<[1], [0], [0], [1], [0, 0, 1, 1], [], []>} : vector<16x64xf32>, vector<64x32xf32>, vector<16x32xf32> -> vector<16x32xf32>
    %96 = vector.broadcast %21 : vector<1x32xf32> to vector<16x32xf32>
    %97 = arith.addf %95, %96 : vector<16x32xf32>
    %98 = arith.addf %89, %97 : vector<16x32xf32>
    %cst_48 = arith.constant dense<0.000000e+00> : vector<16xf32>
    %99 = vector.multi_reduction <add>, %98, %cst_48 [1] : vector<16x32xf32> to vector<16xf32>
    %100 = vector.shape_cast %99 : vector<16xf32> to vector<16x1xf32>
    %cst_49 = arith.constant 3.200000e+01 : f32
    %101 = vector.broadcast %cst_49 : f32 to vector<16x1xf32>
    %102 = arith.divf %100, %101 : vector<16x1xf32>
    %103 = vector.broadcast %102 : vector<16x1xf32> to vector<16x32xf32>
    %104 = arith.subf %98, %103 : vector<16x32xf32>
    %105 = arith.mulf %104, %104 : vector<16x32xf32>
    %cst_50 = arith.constant dense<0.000000e+00> : vector<16xf32>
    %106 = vector.multi_reduction <add>, %105, %cst_50 [1] : vector<16x32xf32> to vector<16xf32>
    %107 = vector.shape_cast %106 : vector<16xf32> to vector<16x1xf32>
    %cst_51 = arith.constant 3.200000e+01 : f32
    %108 = vector.broadcast %cst_51 : f32 to vector<16x1xf32>
    %109 = arith.divf %107, %108 : vector<16x1xf32>
    %110 = vector.broadcast %102 : vector<16x1xf32> to vector<16x32xf32>
    %111 = arith.subf %98, %110 : vector<16x32xf32>
    %cst_52 = arith.constant 9.99999974E-6 : f32
    %112 = vector.broadcast %cst_52 : f32 to vector<16x1xf32>
    %113 = arith.addf %109, %112 : vector<16x1xf32>
    %114 = math.rsqrt %113 : vector<16x1xf32>
    %115 = vector.broadcast %114 : vector<16x1xf32> to vector<16x32xf32>
    %116 = arith.mulf %111, %115 : vector<16x32xf32>
    %117 = vector.broadcast %22 : vector<1x32xf32> to vector<16x32xf32>
    %118 = arith.mulf %116, %117 : vector<16x32xf32>
    %119 = vector.broadcast %23 : vector<1x32xf32> to vector<16x32xf32>
    %120 = arith.addf %118, %119 : vector<16x32xf32>
    %c0_53 = arith.constant 0 : index
    %c0_54 = arith.constant 0 : index
    %121 = vector.load %arg7[%c0_53, %c0_54] : memref<16x32xf32, #tpu.memory_space<vmem>>, vector<16x32xf32>
    tpu.vector_store %arg7[%c0_53, %c0_54], %120 {strides = array<i32>} : memref<16x32xf32, #tpu.memory_space<vmem>>, vector<16x32xf32>,
    return
  }
  func.func @transform_0(%arg0: i32) -> (i32, i32) {
    %c0_i32 = arith.constant 0 : i32
    %c0_i32_0 = arith.constant 0 : i32
    %c0_i32_1 = arith.constant 0 : i32
    return %c0_i32, %c0_i32_0 : i32, i32
  }
  func.func @transform_1(%arg0: i32) -> (i32, i32) {
    %c0_i32 = arith.constant 0 : i32
    %c0_i32_0 = arith.constant 0 : i32
    %c0_i32_1 = arith.constant 0 : i32
    return %c0_i32, %c0_i32_0 : i32, i32
  }
  func.func @transform_2(%arg0: i32) -> (i32, i32) {
    %c0_i32 = arith.constant 0 : i32
    %c0_i32_0 = arith.constant 0 : i32
    %c0_i32_1 = arith.constant 0 : i32
    return %c0_i32, %c0_i32_0 : i32, i32
  }
  func.func @transform_3(%arg0: i32) -> (i32, i32) {
    %c0_i32 = arith.constant 0 : i32
    %c0_i32_0 = arith.constant 0 : i32
    %c0_i32_1 = arith.constant 0 : i32
    return %c0_i32, %c0_i32_0 : i32, i32
  }
  func.func @transform_4(%arg0: i32) -> (i32, i32) {
    %c0_i32 = arith.constant 0 : i32
    %c0_i32_0 = arith.constant 0 : i32
    %c0_i32_1 = arith.constant 0 : i32
    return %c0_i32, %c0_i32_0 : i32, i32
  }
  func.func @transform_5(%arg0: i32) -> (i32, i32) {
    %c0_i32 = arith.constant 0 : i32
    %c0_i32_0 = arith.constant 0 : i32
    %c0_i32_1 = arith.constant 0 : i32
    return %c0_i32, %c0_i32_0 : i32, i32
  }
  func.func @transform_6(%arg0: i32) -> (i32, i32) {
    %c0_i32 = arith.constant 0 : i32
    %c0_i32_0 = arith.constant 0 : i32
    %c0_i32_1 = arith.constant 0 : i32
    return %c0_i32, %c0_i32_0 : i32, i32
  }
}

</mosaic_0001>

<bundles_post_ra>
// kernel: graph_transformer_layer.1
= control target key start
LH: loop header
LB: loop body
LE: loop exit
PB: predicated region body
PF: predicated region fallthrough
CT: control target
= control target key end

     0   :  { %11 = vsyncpa [#allocation3], 0  ;;  %s2902_s0 = inlined_call_operand.vmem [shape: f32[16,32], index: 0, kind: input, shape index: {}]   ;;  %s2903_s1 = inlined_call_operand.vmem [shape: f32[128,32], index: 1, kind: input, shape index: {}]   ;;  %s2904_s2 = inlined_call_operand.hbm [shape: f32[32,1024], index: 2, kind: input, shape index: {}]   ;;  %s2905_s3 = inlined_call_operand.vmem [shape: f32[64,32], index: 3, kind: input, shape index: {}]   ;;  %s2906_s4 = inlined_call_operand.vmem [shape: f32[128,16], index: 4, kind: input, shape index: {}]   ;;  %s2907_s5 = inlined_call_operand.vmem [shape: f32[16,128], index: 5, kind: input, shape index: {}]   ;;  %s2908_s6 = inlined_call_operand.hbm [shape: f32[16,32], index: 6, kind: output, shape index: {}]  }
   0x1   :  { %12 = vsyncpa [#allocation4], 0  ;;  %s2386_s21 = smov [#allocation2]  }
   0x2   :  { %s22_s22 = sshll.u32 %s2386_s21, 4  ;;  %s23_s22 = int_to_ptr.vmem [resolvable:$true] %s22_s22 }
   0x3   :  { %s2350_s23 = scalar_lea.vmem %s23_s22, 4096  ;;  %p2355_p1 = scmp.lt.s32.totalorder %s23_s22, %s23_s22 }
   0x4   :  { %p2351_p0 = scmp.ne.s32.totalorder %s23_s22, %s2350_s23  ;;  %p2356_p2 = scmp.lt.s32.totalorder %s2350_s23, %s2350_s23 }
   0x6   :  { %p2357_p3 = por %p2356_p2, %p2355_p1 }
   0x8   :  { %p2358_p4 = pnand %p2357_p3, %p2351_p0 }
   0xa   :  { %2361 = shalt.err (!%p2358_p4)
}
   0xb   :  { %s2387_s24 = smov 1024   ;;  %s2388_s25 = smov 64  }
   0xc   :  { %28 = dma.hbm_to_vmem [thread:$0]  %s2904_s2, 4096, %s23_s22, [#allocation3], %s2387_s24, %s2387_s24, %s2388_s25  }
   0xd   :  { %2382 = dma.done.wait [#allocation3], 4096  }
   0xe   :  { %2383 = vsyncadd [#allocation3], 4294963200  ;;  %vm128_vm0 = vcmask 261120   ;;  %v87_v0 = vld [vmem:[#allocation2 + $0xc8] sm:$0xff]  ;;  %v38_v2 = vld [vmem:[%s2902_s0] sm:$0xff]  ;;  %vm714_vm1 = vcmask 130048  }
   0xf   :  { %v86_v1 = vld [vmem:[#allocation2 + $0x88] sm:$0xff]  ;;  %2075 = vmatprep.subr.mxu1 %v87_v0  ;;  %2083 = vmatprep.mubr.msk.f32.mxu1 %vm128_vm0, %v38_v2  ;;  %v83_v5 = vld [vmem:[#allocation2 + $0xc0] sm:$0xff]  ;;  %v95_v8 = vld [vmem:[#allocation2 + $0xd8] sm:$0xff]  ;;  %vm1683_vm2 = vcmask 523264   ;;  %s2389_s8 = smov [#allocation5]  }
  0x10   :  { %2076 = vmatpush3.msra.mxu1 %v87_v0  ;;  %v85_v3 = vld [vmem:[#allocation2 + $0x48] sm:$0xff]  ;;  %2072 = vmatprep.mubr.msk.f32.mxu0 %vm128_vm0, %v38_v2  ;;  %v82_v6 = vld [vmem:[#allocation2 + $0x80] sm:$0xff]  ;;  %v94_v10 = vld [vmem:[#allocation2 + $0x98] sm:$0xff] }
  0x11   :  { %2077 = vmatprep.subr.mxu1 %v86_v1  ;;  %v84_v4 = vld [vmem:[#allocation2 + $0x8] sm:$0xff]  ;;  %2064 = vmatprep.subr.mxu0 %v83_v5  ;;  %v40_v9 = vld [vmem:[%s2903_s1] sm:$0xff]  ;;  %v93_v12 = vld [vmem:[#allocation2 + $0x58] sm:$0xff] }
  0x12   :  { %2078 = vmatpush3.msra.mxu1 %v86_v1  ;;  %v39_v7 = vld [vmem:[%s2902_s0 + $0x8] sm:$0xff]  ;;  %2065 = vmatpush3.msra.mxu0 %v83_v5  ;;  %v81_v11 = vld [vmem:[#allocation2 + $0x40] sm:$0xff]  ;;  %v92_v14 = vld [vmem:[#allocation2 + $0x18] sm:$0xff] }
  0x13   :  { %2079 = vmatprep.subr.mxu1 %v85_v3  ;;  %2066 = vmatprep.subr.mxu0 %v82_v6  ;;  %v80_v13 = vld [vmem:[#allocation2] sm:$0xff]  ;;  %v91_v15 = vld [vmem:[#allocation2 + $0xd0] sm:$0xff]  ;;  %v41_v16 = vld [vmem:[%s2903_s1 + $0x8] sm:$0xff] }
  0x14   :  { %2080 = vmatpush3.msra.mxu1 %v85_v3  ;;  %2067 = vmatpush3.msra.mxu0 %v82_v6  ;;  %v42_v17 = vld [vmem:[%s2903_s1 + $0x10] sm:$0xff]  ;;  %v43_v20 = vld [vmem:[%s2903_s1 + $0x18] sm:$0xff]  ;;  %v44_v21 = vld [vmem:[%s2903_s1 + $0x20] sm:$0xff] }
  0x15   :  { %2081 = vmatprep.subr.mxu1 %v84_v4  ;;  %2068 = vmatprep.subr.mxu0 %v81_v11  ;;  %v90_v18 = vld [vmem:[#allocation2 + $0x90] sm:$0xff]  ;;  %v99_v23 = vld [vmem:[#allocation2 + $0xe0] sm:$0xff]  ;;  %v45_v24 = vld [vmem:[%s2903_s1 + $0x28] sm:$0xff] }
  0x16   :  { %2082 = vmatpush3.msra.mxu1 %v84_v4  ;;  %2069 = vmatpush3.msra.mxu0 %v81_v11  ;;  %v89_v19 = vld [vmem:[#allocation2 + $0x50] sm:$0xff]  ;;  %v98_v26 = vld [vmem:[#allocation2 + $0xa0] sm:$0xff]  ;;  %v47_v27 = vld [vmem:[%s2903_s1 + $0x38] sm:$0xff] }
  0x17   :  { %2084 = vmatmul.mubr.msk.f32.vlgmr.msra.gmra.mxu1 %vm128_vm0, %v39_v7  ;;  %2097 = vmatprep.subr.mxu1 %v95_v8  ;;  %v88_v22 = vld [vmem:[#allocation2 + $0x10] sm:$0xff]  ;;  %v48_v28 = vld [vmem:[%s2903_s1 + $0x40] sm:$0xff]  ;;  %v49_v29 = vld [vmem:[%s2903_s1 + $0x48] sm:$0xff] }
  0x18   :  { %2098 = vmatpush3.msra.mxu1 %v95_v8  ;;  %2105 = vmatprep.mubr.msk.f32.mxu1 %vm128_vm0, %v40_v9  ;;  %v46_v25 = vld [vmem:[%s2903_s1 + $0x30] sm:$0xff]  ;;  %v51_v31 = vld [vmem:[%s2903_s1 + $0x58] sm:$0xff]  ;;  %v52_v32 = vld [vmem:[%s2903_s1 + $0x60] sm:$0xff] }
  0x19   :  { %2099 = vmatprep.subr.mxu1 %v94_v10  ;;  %2070 = vmatprep.subr.mxu0 %v80_v13  ;;  %v50_v30 = vld [vmem:[%s2903_s1 + $0x50] sm:$0xff]  ;;  %v53_v33 = vld [vmem:[%s2903_s1 + $0x68] sm:$0xff]  ;;  %v55_v35 = vld [vmem:[%s2903_s1 + $0x78] sm:$0xff] }
  0x1a   :  { %2100 = vmatpush3.msra.mxu1 %v94_v10  ;;  %2071 = vmatpush3.msra.mxu0 %v80_v13  ;;  %v54_v34 = vld [vmem:[%s2903_s1 + $0x70] sm:$0xff]  ;;  %v97_v36 = vld [vmem:[#allocation2 + $0x60] sm:$0xff]  ;;  %v57_v44 = vld [vmem:[%s2906_s4 + $0x8] sm:$0xff] }
  0x1b   :  { %2101 = vmatprep.subr.mxu1 %v93_v12  ;;  %2086 = vmatprep.subr.mxu0 %v91_v15  ;;  %v96_v37 = vld [vmem:[#allocation2 + $0x20] sm:$0xff]  ;;  %v58_v45 = vld [vmem:[%s2906_s4 + $0x10] sm:$0xff]  ;;  %v59_v46 = vld [vmem:[%s2906_s4 + $0x18] sm:$0xff] }
  0x1c   :  { %2102 = vmatpush3.msra.mxu1 %v93_v12  ;;  %2073 = vmatmul.mubr.msk.f32.vlgmr.msra.gmra.mxu0 %vm128_vm0, %v39_v7  ;;  %v56_v38 = vld [vmem:[%s2906_s4] sm:$0xff]  ;;  %v61_v49 = vld [vmem:[%s2906_s4 + $0x28] sm:$0xff]  ;;  %v62_v50 = vld [vmem:[%s2906_s4 + $0x30] sm:$0xff] }
  0x1d   :  { %2103 = vmatprep.subr.mxu1 %v92_v14  ;;  %2087 = vmatpush3.msra.mxu0 %v91_v15  ;;  %v1827_v39 = vld [vmem:[%s2907_s5 + $0x1] ss:$0 sm:$0xff]  ;;  %v1830_v52 = vld [vmem:[%s2907_s5 + $0x2] ss:$0 sm:$0xff]  ;;  %v63_v54 = vld [vmem:[%s2906_s4 + $0x38] sm:$0xff] }
  0x1e   :  { %2104 = vmatpush3.msra.mxu1 %v92_v14  ;;  %2088 = vmatprep.subr.mxu0 %v90_v18  ;;  %v60_v47 = vld [vmem:[%s2906_s4 + $0x20] sm:$0xff]  ;;  %v65_v59 = vld [vmem:[%s2906_s4 + $0x48] sm:$0xff]  ;;  %v66_v60 = vld [vmem:[%s2906_s4 + $0x50] sm:$0xff] }
  0x1f   :  { %2106 = vmatmul.mubr.msk.f32.vlgmr.msra.gmra.mxu1 %vm128_vm0, %v41_v16  ;;  %2089 = vmatpush3.msra.mxu0 %v90_v18  ;;  %v64_v56 = vld [vmem:[%s2906_s4 + $0x40] sm:$0xff]  ;;  %v67_v61 = vld [vmem:[%s2906_s4 + $0x58] sm:$0xff]  ;;  %v69_v63 = vld [vmem:[%s2906_s4 + $0x68] sm:$0xff] }
  0x20   :  { %2108 = vmatprep.mubr.msk.f32.mxu1 %vm128_vm0, %v42_v17  ;;  %2094 = vmatprep.mubr.msk.f32.mxu0 %vm128_vm0, %v38_v2  ;;  %v68_v62 = vld [vmem:[%s2906_s4 + $0x60] sm:$0xff]  ;;  %v70_v0 = vld [vmem:[%s2906_s4 + $0x70] sm:$0xff]  ;;  %v71_v1 = vld [vmem:[%s2906_s4 + $0x78] sm:$0xff] }
  0x21   :  { %2090 = vmatprep.subr.mxu0 %v89_v19  ;;  %v111_v2 = vld [vmem:[#allocation2 + $0xf8] sm:$0xff] }
  0x22   :  { %2091 = vmatpush3.msra.mxu0 %v89_v19  ;;  %v110_v3 = vld [vmem:[#allocation2 + $0xb8] sm:$0xff] }
  0x23   :  { %2109 = vmatmul.mubr.msk.f32.gmra.mxu1 %vm128_vm0, %v43_v20  ;;  %2092 = vmatprep.subr.mxu0 %v88_v22  ;;  %v109_v4 = vld [vmem:[#allocation2 + $0x78] sm:$0xff] }
  0x24   :  { %2111 = vmatprep.mubr.msk.f32.mxu1 %vm128_vm0, %v44_v21  ;;  %2093 = vmatpush3.msra.mxu0 %v88_v22  ;;  %v108_v5 = vld [vmem:[#allocation2 + $0x38] sm:$0xff] }
  0x25   :  { %2129 = vmatprep.subr.mxu0 %v99_v23  ;;  %2095 = vmatmul.mubr.msk.f32.vlgmr.msra.gmra.mxu0 %vm128_vm0, %v39_v7 }
  0x26   :  { %2130 = vmatpush3.msra.mxu0 %v99_v23  ;;  %2137 = vmatprep.mubr.msk.f32.mxu0 %vm128_vm0, %v40_v9 }
  0x27   :  { %2112 = vmatmul.mubr.msk.f32.gmra.mxu1 %vm128_vm0, %v45_v24  ;;  %2131 = vmatprep.subr.mxu0 %v98_v26 }
  0x28   :  { %2114 = vmatprep.mubr.msk.f32.mxu1 %vm128_vm0, %v46_v25  ;;  %2132 = vmatpush3.msra.mxu0 %v98_v26 }
  0x29   :  { %2133 = vmatprep.subr.mxu0 %v97_v36 }
  0x2a   :  { %2134 = vmatpush3.msra.mxu0 %v97_v36 }
  0x2b   :  { %2115 = vmatmul.mubr.msk.f32.gmra.mxu1 %vm128_vm0, %v47_v27  ;;  %2135 = vmatprep.subr.mxu0 %v96_v37 }
  0x2c   :  { %2117 = vmatprep.mubr.msk.f32.mxu1 %vm128_vm0, %v48_v28  ;;  %2136 = vmatpush3.msra.mxu0 %v96_v37 }
  0x2d   :  { %2138 = vmatmul.mubr.msk.f32.vlgmr.msra.gmra.mxu0 %vm128_vm0, %v41_v16 }
  0x2e   :  { %2140 = vmatprep.mubr.msk.f32.mxu0 %vm128_vm0, %v42_v17 }
  0x2f   :  { %2118 = vmatmul.mubr.msk.f32.gmra.mxu1 %vm128_vm0, %v49_v29 }
  0x30   :  { %2120 = vmatprep.mubr.msk.f32.mxu1 %vm128_vm0, %v50_v30 }
  0x31   :  { %2141 = vmatmul.mubr.msk.f32.gmra.mxu0 %vm128_vm0, %v43_v20 }
  0x32   :  { %2143 = vmatprep.mubr.msk.f32.mxu0 %vm128_vm0, %v44_v21 }
  0x33   :  { %2121 = vmatmul.mubr.msk.f32.gmra.mxu1 %vm128_vm0, %v51_v31 }
  0x34   :  { %2123 = vmatprep.mubr.msk.f32.mxu1 %vm128_vm0, %v52_v32 }
  0x35   :  { %2144 = vmatmul.mubr.msk.f32.gmra.mxu0 %vm128_vm0, %v45_v24 }
  0x36   :  { %2146 = vmatprep.mubr.msk.f32.mxu0 %vm128_vm0, %v46_v25 }
  0x37   :  { %2124 = vmatmul.mubr.msk.f32.gmra.mxu1 %vm128_vm0, %v53_v33 }
  0x38   :  { %2126 = vmatprep.mubr.msk.f32.mxu1 %vm128_vm0, %v54_v34 }
  0x39   :  { %2147 = vmatmul.mubr.msk.f32.gmra.mxu0 %vm128_vm0, %v47_v27 }
  0x3a   :  { %2149 = vmatprep.mubr.msk.f32.mxu0 %vm128_vm0, %v48_v28 }
  0x3b   :  { %2127 = vmatmul.mubr.msk.f32.gmra.mxu1 %vm128_vm0, %v55_v35 }
  0x3c   :  { %2165 = vmatprep.mubr.msk.f32.mxu1 %vm714_vm1, %v56_v38 }
  0x3d   :  { %2150 = vmatmul.mubr.msk.f32.gmra.mxu0 %vm128_vm0, %v49_v29  ;;  %v2631_v29 = vld [vmem:[%s2907_s5 + $0x4] ss:$0 sm:$0xff] }
  0x3e   :  { %2152 = vmatprep.mubr.msk.f32.mxu0 %vm128_vm0, %v50_v30  ;;  %v2636_v30 = vld [vmem:[%s2907_s5 + $0x3] ss:$0 sm:$0xff] }
  0x41   :  { %2153 = vmatmul.mubr.msk.f32.gmra.mxu0 %vm128_vm0, %v51_v31  ;;  %v1824_v31 = vld [vmem:[%s2907_s5] ss:$0 sm:$0xff] }
  0x42   :  { %2155 = vmatprep.mubr.msk.f32.mxu0 %vm128_vm0, %v52_v32 }
  0x45   :  { %2156 = vmatmul.mubr.msk.f32.gmra.mxu0 %vm128_vm0, %v53_v33 }
  0x46   :  { %2158 = vmatprep.mubr.msk.f32.mxu0 %vm128_vm0, %v54_v34 }
  0x49   :  { %2159 = vmatmul.mubr.msk.f32.gmra.mxu0 %vm128_vm0, %v55_v35 }
  0x4a   :  { %2193 = vmatprep.mubr.msk.f32.mxu0 %vm714_vm1, %v56_v38 }
  0xd7   :  { %v2085_v40 = vpop.f32.mrf.mxu1 }
  0xd8   :  { %v286_v41 = vadd.f32 %v2085_v40, %v1827_v39 }
  0xd9   :  { %v280_v42 = vpop.f32.mrf.mxu1 }
  0xda   :  { %v281_v43 = vadd.f32 %v1827_v39, %v280_v42  ;;  %2161 = vmatprep.subr.mxu1 %v286_v41 }
  0xdb   :  { %2162 = vmatpush3.msra.mxu1 %v286_v41 }
  0xdc   :  { %2163 = vmatprep.subr.mxu1 %v281_v43  ;;  %v2544_v48 = vpop.f32.mrf.mxu0 }
  0xdd   :  { %2164 = vmatpush3.msra.mxu1 %v281_v43  ;;  %v2650_v38 = vadd.f32 %v2544_v48, %v1824_v31 }
  0xde   :  { %2166 = vmatmul.mubr.msk.f32.vlgmr.msra.gmra.mxu1 %vm714_vm1, %v57_v44  ;;  %v2554_v51 = vpop.f32.mrf.mxu0  ;;  %2217 = vmatprep.subr.mxu1 %v111_v2 }
  0xdf   :  { %2168 = vmatprep.mubr.msk.f32.mxu1 %vm714_vm1, %v58_v45  ;;  %2218 = vmatpush3.msra.mxu1 %v111_v2  ;;  %v2107_v6 = vpop.f32.mrf.mxu1  ;;  %v2646_v36 = vadd.f32 %v1824_v31, %v2554_v51 }
  0xe0   :  { %2219 = vmatprep.subr.mxu1 %v110_v3  ;;  %v492_v37 = vadd.f32 %v2107_v6, %v2636_v30 }
  0xe1   :  { %2220 = vmatpush3.msra.mxu1 %v110_v3  ;;  %v486_v7 = vpop.f32.mrf.mxu1 }
  0xe2   :  { %2169 = vmatmul.mubr.msk.f32.gmra.mxu1 %vm714_vm1, %v59_v46  ;;  %2221 = vmatprep.subr.mxu1 %v109_v4  ;;  %v487_v35 = vadd.f32 %v2636_v30, %v486_v7 }
  0xe3   :  { %2171 = vmatprep.mubr.msk.f32.mxu1 %vm714_vm1, %v60_v47  ;;  %2222 = vmatpush3.msra.mxu1 %v109_v4  ;;  %v2110_v8 = vpop.f32.mrf.mxu1 }
  0xe4   :  { %2223 = vmatprep.subr.mxu1 %v108_v5 }
  0xe5   :  { %v2096_v53 = vpop.f32.mrf.mxu0  ;;  %2224 = vmatpush3.msra.mxu1 %v108_v5  ;;  %v496_v9 = vpop.f32.mrf.mxu1 }
  0xe6   :  { %2172 = vmatmul.mubr.msk.f32.gmra.mxu1 %vm714_vm1, %v61_v49  ;;  %v365_v55 = vadd.f32 %v2096_v53, %v1830_v52 }
  0xe7   :  { %2174 = vmatprep.mubr.msk.f32.mxu1 %vm714_vm1, %v62_v50  ;;  %v359_v57 = vpop.f32.mrf.mxu0  ;;  %v2113_v10 = vpop.f32.mrf.mxu1 }
  0xe8   :  { %v360_v58 = vadd.f32 %v1830_v52, %v359_v57  ;;  %2189 = vmatprep.subr.mxu0 %v365_v55 }
  0xe9   :  { %2190 = vmatpush3.msra.mxu0 %v365_v55  ;;  %v506_v11 = vpop.f32.mrf.mxu1 }
  0xea   :  { %2175 = vmatmul.mubr.msk.f32.gmra.mxu1 %vm714_vm1, %v63_v54  ;;  %2191 = vmatprep.subr.mxu0 %v360_v58 }
  0xeb   :  { %2177 = vmatprep.mubr.msk.f32.mxu1 %vm714_vm1, %v64_v56  ;;  %2192 = vmatpush3.msra.mxu0 %v360_v58  ;;  %v2612_v12 = vpop.f32.mrf.mxu1  ;;  %v507_v58 = vadd.f32 %v2636_v30, %v506_v11 }
  0xec   :  { %2194 = vmatmul.mubr.msk.f32.vlgmr.msra.gmra.mxu0 %vm714_vm1, %v57_v44 }
  0xed   :  { %2196 = vmatprep.mubr.msk.f32.mxu0 %vm714_vm1, %v58_v45  ;;  %v516_v13 = vpop.f32.mrf.mxu1  ;;  %v2139_v14 = vpop.f32.mrf.mxu0  ;;  %v497_v45 = vadd.f32 %v2636_v30, %v496_v9 }
  0xee   :  { %2178 = vmatmul.mubr.msk.f32.gmra.mxu1 %vm714_vm1, %v65_v59  ;;  %v641_v33 = vadd.f32 %v2139_v14, %v2631_v29  ;;  %v517_v7 = vadd.f32 %v2636_v30, %v516_v13 }
  0xef   :  { %2180 = vmatprep.mubr.msk.f32.mxu1 %vm714_vm1, %v66_v60  ;;  %v2614_v15 = vpop.f32.mrf.mxu1  ;;  %v635_v16 = vpop.f32.mrf.mxu0 }
  0xf0   :  { %2197 = vmatmul.mubr.msk.f32.gmra.mxu0 %vm714_vm1, %v59_v46  ;;  %v636_v40 = vadd.f32 %v2631_v29, %v635_v16  ;;  %v1053_v46 = vadd.f32 %v487_v35, %v2646_v36  ;;  %v532_v35 = vadd.f32 %v2614_v15, %v2636_v30 }
  0xf1   :  { %2199 = vmatprep.mubr.msk.f32.mxu0 %vm714_vm1, %v60_v47  ;;  %v2616_v17 = vpop.f32.mrf.mxu1  ;;  %v2142_v18 = vpop.f32.mrf.mxu0 }
  0xf2   :  { %2181 = vmatmul.mubr.msk.f32.gmra.mxu1 %vm714_vm1, %v67_v61  ;;  %v651_v42 = vadd.f32 %v2142_v18, %v2631_v29  ;;  %v527_v31 = vadd.f32 %v2636_v30, %v2616_v17 }
  0xf3   :  { %2183 = vmatprep.mubr.msk.f32.mxu1 %vm714_vm1, %v68_v62  ;;  %v2618_v19 = vpop.f32.mrf.mxu1  ;;  %v645_v20 = vpop.f32.mrf.mxu0 }
  0xf4   :  { %2200 = vmatmul.mubr.msk.f32.gmra.mxu0 %vm714_vm1, %v61_v49  ;;  %v502_v49 = vadd.f32 %v2110_v8, %v2636_v30  ;;  %v646_v52 = vadd.f32 %v2631_v29, %v645_v20  ;;  %v1057_v8 = vadd.f32 %v507_v58, %v2646_v36 }
  0xf5   :  { %2202 = vmatprep.mubr.msk.f32.mxu0 %vm714_vm1, %v62_v50  ;;  %v2620_v21 = vpop.f32.mrf.mxu1  ;;  %v2145_v22 = vpop.f32.mrf.mxu0  ;;  %v1054_v50 = vadd.f32 %v492_v37, %v2650_v38 }
  0xf6   :  { %2184 = vmatmul.mubr.msk.f32.gmra.mxu1 %vm714_vm1, %v69_v63  ;;  %v661_v55 = vadd.f32 %v2145_v22, %v2631_v29 }
  0xf7   :  { %2186 = vmatprep.mubr.msk.f32.mxu1 %vm714_vm1, %v70_v0  ;;  %v2622_v23 = vpop.f32.mrf.mxu1  ;;  %v655_v24 = vpop.f32.mrf.mxu0 }
  0xf8   :  { %2203 = vmatmul.mubr.msk.f32.gmra.mxu0 %vm714_vm1, %v63_v54 }
  0xf9   :  { %2205 = vmatprep.mubr.msk.f32.mxu0 %vm714_vm1, %v64_v56  ;;  %v2624_v25 = vpop.f32.mrf.mxu1  ;;  %v2148_v26 = vpop.f32.mrf.mxu0 }
  0xfa   :  { %2187 = vmatmul.mubr.msk.f32.gmra.mxu1 %vm714_vm1, %v71_v1  ;;  %v671_v4 = vadd.f32 %v2148_v26, %v2631_v29 }
  0xfb   :  { %v2626_v27 = vpop.f32.mrf.mxu1  ;;  %v665_v28 = vpop.f32.mrf.mxu0 }
  0xfc   :  { %2206 = vmatmul.mubr.msk.f32.gmra.mxu0 %vm714_vm1, %v65_v59  ;;  %v1055_v59 = vadd.f32 %v497_v45, %v2646_v36  ;;  %v666_v18 = vadd.f32 %v2631_v29, %v665_v28  ;;  %v537_v45 = vadd.f32 %v2636_v30, %v2620_v21 }
  0xfd   :  { %2208 = vmatprep.mubr.msk.f32.mxu0 %vm714_vm1, %v66_v60  ;;  %v2641_v32 = vpop.f32.mrf.mxu1  ;;  %v2151_v34 = vpop.f32.mrf.mxu0 }
  0xfe   :  { %v681_v13 = vadd.f32 %v2151_v34, %v2631_v29 }
  0xff   :  { %v675_v44 = vpop.f32.mrf.mxu0 }
 0x100   :  { %2209 = vmatmul.mubr.msk.f32.gmra.mxu0 %vm714_vm1, %v67_v61  ;;  %v512_v61 = vadd.f32 %v2113_v10, %v2636_v30  ;;  %v522_v10 = vadd.f32 %v2612_v12, %v2636_v30  ;;  %v676_v34 = vadd.f32 %v2631_v29, %v675_v44 }
 0x101   :  { %2211 = vmatprep.mubr.msk.f32.mxu0 %vm714_vm1, %v68_v62  ;;  %v2154_v57 = vpop.f32.mrf.mxu0  ;;  %v1056_v62 = vadd.f32 %v502_v49, %v2650_v38  ;;  %v1062_v49 = vadd.f32 %v532_v35, %v2650_v38 }
 0x102   :  { %v1058_v11 = vadd.f32 %v512_v61, %v2650_v38  ;;  %v1060_v37 = vadd.f32 %v522_v10, %v2650_v38  ;;  %v691_v17 = vadd.f32 %v2154_v57, %v2631_v29  ;;  %v552_v57 = vadd.f32 %v2622_v23, %v2636_v30 }
 0x103   :  { %v685_v6 = vpop.f32.mrf.mxu0 }
 0x104   :  { %2212 = vmatmul.mubr.msk.f32.gmra.mxu0 %vm714_vm1, %v69_v63 }
 0x105   :  { %2214 = vmatprep.mubr.msk.f32.mxu0 %vm714_vm1, %v70_v0  ;;  %v2157_v26 = vpop.f32.mrf.mxu0 }
 0x106   :  { %v701_v21 = vadd.f32 %v2157_v26, %v2631_v29 }
 0x108   :  { %2215 = vmatmul.mubr.msk.f32.gmra.mxu0 %vm714_vm1, %v71_v1  ;;  %v656_v1 = vadd.f32 %v2631_v29, %v655_v24 }
 0x19e   :  { %v2167_v39 = vpop.f32.mrf.mxu1 }
 0x19f   :  { %v1070_v41 = vadd.f32 %v2167_v39, %v641_v33  ;;  %v1059_v33 = vadd.f32 %v517_v7, %v2646_v36 }
 0x1a0   :  { %v829_v43 = vpop.f32.mrf.mxu1 }
 0x1a1   :  { %v1069_v47 = vadd.f32 %v829_v43, %v636_v40  ;;  %v1086_v53 = vmul.f32 %v1070_v41, %v1054_v50  ;;  %v695_v43 = vpop.f32.mrf.mxu0 }
 0x1a2   :  { %v2170_v51 = vpop.f32.mrf.mxu1  ;;  %v696_v61 = vadd.f32 %v2631_v29, %v695_v43 }
 0x1a3   :  { %v1085_v48 = vmul.f32 %v1069_v47, %v1053_v46  ;;  %v1072_v54 = vadd.f32 %v2170_v51, %v651_v42  ;;  %v1061_v46 = vadd.f32 %v527_v31, %v2646_v36  ;;  %v542_v47 = vadd.f32 %v2618_v19, %v2636_v30 }
 0x1a4   :  { %v839_v56 = vpop.f32.mrf.mxu1  ;;  %v686_v51 = vadd.f32 %v2631_v29, %v685_v6 }
 0x1a5   :  { %v1071_v60 = vadd.f32 %v839_v56, %v646_v52  ;;  %2225 = vmatprep.mubr.msk.f32.mxu1 %vm128_vm0, %v1085_v48  ;;  %v1088_v2 = vmul.f32 %v1072_v54, %v1056_v62  ;;  %v2160_v54 = vpop.f32.mrf.mxu0  ;;  %v1063_v56 = vadd.f32 %v537_v45, %v2646_v36  ;;  %v1064_v58 = vadd.f32 %v542_v47, %v2650_v38 }
 0x1a6   :  { %v2173_v63 = vpop.f32.mrf.mxu1  ;;  %2226 = vmatmul.mubr.msk.f32.vlgmr.msra.gmra.mxu1 %vm128_vm0, %v1086_v53 }
 0x1a7   :  { %v1087_v0 = vmul.f32 %v1071_v60, %v1055_v59  ;;  %v1074_v3 = vadd.f32 %v2173_v63, %v661_v55  ;;  %v547_v55 = vadd.f32 %v2636_v30, %v2624_v25  ;;  %v711_v25 = vadd.f32 %v2160_v54, %v2631_v29 }
 0x1a8   :  { %v849_v5 = vpop.f32.mrf.mxu1 }
 0x1a9   :  { %v1073_v9 = vadd.f32 %v849_v5, %v656_v1  ;;  %2228 = vmatprep.mubr.msk.f32.mxu1 %vm128_vm0, %v1087_v0  ;;  %v1090_v20 = vmul.f32 %v1074_v3, %v1058_v11  ;;  %v705_v1 = vpop.f32.mrf.mxu0  ;;  %v557_v3 = vadd.f32 %v2636_v30, %v2641_v32  ;;  %v562_v5 = vadd.f32 %v2626_v27, %v2636_v30  ;;  %v103_v30 = vld [vmem:[#allocation2 + $0xe8] sm:$0xff] }
 0x1aa   :  { %v2176_v14 = vpop.f32.mrf.mxu1  ;;  %2229 = vmatmul.mubr.msk.f32.gmra.mxu1 %vm128_vm0, %v1088_v2  ;;  %v1065_v2 = vadd.f32 %v547_v55, %v2646_v36  ;;  %2249 = vmatprep.subr.mxu0 %v103_v30 }
 0x1ab   :  { %v1089_v16 = vmul.f32 %v1073_v9, %v1057_v8  ;;  %v1076_v22 = vadd.f32 %v2176_v14, %v671_v4  ;;  %v1066_v4 = vadd.f32 %v552_v57, %v2650_v38  ;;  %v706_v8 = vadd.f32 %v2631_v29, %v705_v1  ;;  %v102_v29 = vld [vmem:[#allocation2 + $0xa8] sm:$0xff]  ;;  %2250 = vmatpush3.msra.mxu0 %v103_v30 }
 0x1ac   :  { %v859_v24 = vpop.f32.mrf.mxu1  ;;  %v1067_v14 = vadd.f32 %v557_v3, %v2646_v36  ;;  %2251 = vmatprep.subr.mxu0 %v102_v29  ;;  %v100_v36 = vld [vmem:[#allocation2 + $0x28] sm:$0xff] }
 0x1ad   :  { %v1075_v12 = vadd.f32 %v859_v24, %v666_v18  ;;  %2231 = vmatprep.mubr.msk.f32.mxu1 %vm128_vm0, %v1089_v16  ;;  %v1092_v40 = vmul.f32 %v1076_v22, %v1060_v37  ;;  %v1068_v16 = vadd.f32 %v562_v5, %v2650_v38  ;;  %2252 = vmatpush3.msra.mxu0 %v102_v29  ;;  %v2759_v5 = vpop.f32.mrf.mxu0 }
 0x1ae   :  { %v2179_v28 = vpop.f32.mrf.mxu1  ;;  %2232 = vmatmul.mubr.msk.f32.gmra.mxu1 %vm128_vm0, %v1090_v20  ;;  %v101_v20 = vld [vmem:[#allocation2 + $0x68] sm:$0xff] }
 0x1af   :  { %v1091_v39 = vmul.f32 %v1075_v12, %v1059_v33  ;;  %v1078_v41 = vadd.f32 %v2179_v28, %v681_v13  ;;  %2253 = vmatprep.subr.mxu0 %v101_v20 }
 0x1b0   :  { %v869_v42 = vpop.f32.mrf.mxu1  ;;  %2254 = vmatpush3.msra.mxu0 %v101_v20 }
 0x1b1   :  { %v1077_v15 = vadd.f32 %v869_v42, %v676_v34  ;;  %2234 = vmatprep.mubr.msk.f32.mxu1 %vm128_vm0, %v1091_v39  ;;  %v1094_v48 = vmul.f32 %v1078_v41, %v1062_v49  ;;  %2255 = vmatprep.subr.mxu0 %v100_v36 }
 0x1b2   :  { %v2182_v44 = vpop.f32.mrf.mxu1  ;;  %2235 = vmatmul.mubr.msk.f32.gmra.mxu1 %vm128_vm0, %v1092_v40  ;;  %2256 = vmatpush3.msra.mxu0 %v100_v36 }
 0x1b3   :  { %v1093_v50 = vmul.f32 %v1077_v15, %v1061_v46  ;;  %v1080_v52 = vadd.f32 %v2182_v44, %v691_v17 }
 0x1b4   :  { %v879_v53 = vpop.f32.mrf.mxu1 }
 0x1b5   :  { %v1079_v19 = vadd.f32 %v879_v53, %v686_v51  ;;  %2237 = vmatprep.mubr.msk.f32.mxu1 %vm128_vm0, %v1093_v50  ;;  %v1096_v62 = vmul.f32 %v1080_v52, %v1064_v58 }
 0x1b6   :  { %v2185_v59 = vpop.f32.mrf.mxu1  ;;  %2238 = vmatmul.mubr.msk.f32.gmra.mxu1 %vm128_vm0, %v1094_v48 }
 0x1b7   :  { %v1095_v60 = vmul.f32 %v1079_v19, %v1063_v56  ;;  %v1082_v63 = vadd.f32 %v2185_v59, %v701_v21 }
 0x1b8   :  { %v889_v0 = vpop.f32.mrf.mxu1 }
 0x1b9   :  { %v1081_v23 = vadd.f32 %v889_v0, %v696_v61  ;;  %2240 = vmatprep.mubr.msk.f32.mxu1 %vm128_vm0, %v1095_v60  ;;  %v1098_v9 = vmul.f32 %v1082_v63, %v1066_v4 }
 0x1ba   :  { %v2188_v6 = vpop.f32.mrf.mxu1  ;;  %2241 = vmatmul.mubr.msk.f32.gmra.mxu1 %vm128_vm0, %v1096_v62 }
 0x1bb   :  { %v1097_v7 = vmul.f32 %v1081_v23, %v1065_v2  ;;  %v1084_v10 = vadd.f32 %v2188_v6, %v711_v25 }
 0x1bc   :  { %v899_v11 = vpop.f32.mrf.mxu1 }
 0x1bd   :  { %v1083_v32 = vadd.f32 %v899_v11, %v706_v8  ;;  %2243 = vmatprep.mubr.msk.f32.mxu1 %vm128_vm0, %v1097_v7  ;;  %v1100_v27 = vmul.f32 %v1084_v10, %v1068_v16 }
 0x1be   :  { %2244 = vmatmul.mubr.msk.f32.gmra.mxu1 %vm128_vm0, %v1098_v9 }
 0x1bf   :  { %v1099_v18 = vmul.f32 %v1083_v32, %v1067_v14  ;;  %v2761_v14 = vpop.f32.mrf.mxu0 }
 0x1c1   :  { %2246 = vmatprep.mubr.msk.f32.mxu1 %vm128_vm0, %v1099_v18 }
 0x1c2   :  { %2247 = vmatmul.mubr.msk.f32.gmra.mxu1 %vm128_vm0, %v1100_v27 }
 0x266   :  { %v2722_v38 = vpop.f32.mrf.mxu1 }
 0x267   :  { %v1309_v48 = vsel %vm128_vm0, %v2722_v38, -inf }
 0x268   :  { %v1215_v22 = vpop.f32.mrf.mxu1 }
 0x269   :  { %v1294_v43 = vsel %vm128_vm0, %v1215_v22, -inf }
 0x26a   :  { %v2230_v13 = vpop.f32.mrf.mxu1 }
 0x26b   :  { %v1310_v45 = vsel %vm128_vm0, %v2230_v13, -inf }
 0x26c   :  { %v1225_v24 = vpop.f32.mrf.mxu1 }
 0x26d   :  { %v1295_v46 = vsel %vm128_vm0, %v1225_v24, -inf }
 0x26e   :  { %v2724_v26 = vpop.f32.mrf.mxu1 }
 0x26f   :  { %v1311_v47 = vsel %vm128_vm0, %v2724_v26, -inf }
 0x270   :  { %v1235_v31 = vpop.f32.mrf.mxu1  ;;  %v1312_v57 = vmax.f32 %v1309_v48, %v1311_v47 }
 0x271   :  { %v1296_v41 = vsel %vm128_vm0, %v1235_v31, -inf }
 0x272   :  { %v2726_v33 = vpop.f32.mrf.mxu1  ;;  %v1297_v52 = vmax.f32 %v1294_v43, %v1296_v41 }
 0x273   :  { %v1313_v17 = vsel %vm128_vm0, %v2726_v33, -inf }
 0x274   :  { %v1245_v12 = vpop.f32.mrf.mxu1  ;;  %v1314_v21 = vmax.f32 %v1310_v45, %v1313_v17 }
 0x275   :  { %v1298_v40 = vsel %vm128_vm0, %v1245_v12, -inf }
 0x276   :  { %v2728_v35 = vpop.f32.mrf.mxu1  ;;  %v1299_v49 = vmax.f32 %v1295_v46, %v1298_v40 }
 0x277   :  { %v1315_v53 = vsel %vm128_vm0, %v2728_v35, -inf }
 0x278   :  { %v1255_v37 = vpop.f32.mrf.mxu1  ;;  %v1316_v63 = vmax.f32 %v1312_v57, %v1315_v53 }
 0x279   :  { %v1300_v44 = vsel %vm128_vm0, %v1255_v37, -inf }
 0x27a   :  { %v2730_v28 = vpop.f32.mrf.mxu1  ;;  %v1301_v58 = vmax.f32 %v1297_v52, %v1300_v44 }
 0x27b   :  { %v1317_v50 = vsel %vm128_vm0, %v2730_v28, -inf }
 0x27c   :  { %v1265_v39 = vpop.f32.mrf.mxu1  ;;  %v1318_v59 = vmax.f32 %v1314_v21, %v1317_v50 }
 0x27d   :  { %v1302_v15 = vsel %vm128_vm0, %v1265_v39, -inf }
 0x27e   :  { %v2732_v34 = vpop.f32.mrf.mxu1  ;;  %v1303_v54 = vmax.f32 %v1299_v49, %v1302_v15 }
 0x27f   :  { %v1319_v61 = vsel %vm128_vm0, %v2732_v34, -inf }
 0x280   :  { %v1275_v42 = vpop.f32.mrf.mxu1  ;;  %v1320_v1 = vmax.f32 %v1316_v63, %v1319_v61 }
 0x281   :  { %v1304_v55 = vsel %vm128_vm0, %v1275_v42, -inf }
 0x282   :  { %v2747_v51 = vpop.f32.mrf.mxu1  ;;  %v1305_v25 = vmax.f32 %v1301_v58, %v1304_v55 }
 0x283   :  { %v1321_v56 = vsel %vm128_vm0, %v2747_v51, -inf }
 0x284   :  { %v1285_v19 = vpop.f32.mrf.mxu1  ;;  %v1322_v0 = vmax.f32 %v1318_v59, %v1321_v56 }
 0x285   :  { %v1306_v60 = vsel %vm128_vm0, %v1285_v19, -inf }
 0x286   :  { %v1307_v62 = vmax.f32 %v1303_v54, %v1306_v60  ;;  %v1323_v3 = vmax.f32 %v1320_v1, %v1322_v0 }
 0x288   :  { %v1308_v2 = vmax.f32 %v1305_v25, %v1307_v62  ;;  %v1327_v8 = vsub.f32 %v2230_v13, %v1323_v3  ;;  %v1329_v32 = vsub.f32 %v2724_v26, %v1323_v3  ;;  %v1325_v29 = vsub.f32 %v2722_v38, %v1323_v3 }
 0x289   :  { %v1331_v13 = vsub.f32 %v2726_v33, %v1323_v3  ;;  %v1333_v26 = vsub.f32 %v2728_v35, %v1323_v3  ;;  %v1335_v38 = vsub.f32 %v2730_v28, %v1323_v3  ;;  %v1337_v33 = vsub.f32 %v2732_v34, %v1323_v3 }
 0x28a   :  { %v1324_v23 = vsub.f32 %v1215_v22, %v1308_v2  ;;  %v1326_v4 = vsub.f32 %v1225_v24, %v1308_v2  ;;  %v1328_v6 = vsub.f32 %v1235_v31, %v1308_v2  ;;  %v1330_v7 = vsub.f32 %v1245_v12, %v1308_v2  ;;  %v2765_v22 = vpop.f32.mrf.mxu0 }
 0x28b   :  { %v1332_v10 = vsub.f32 %v1255_v37, %v1308_v2  ;;  %v1334_v18 = vsub.f32 %v1265_v39, %v1308_v2  ;;  %v1346_v30 = vmul.f32 1.442695, %v1327_v8  ;;  %v1336_v20 = vsub.f32 %v1275_v42, %v1308_v2 }
 0x28c   :  { %v1340_v9 = vmul.f32 1.442695, %v1324_v23  ;;  %v1344_v11 = vmul.f32 1.442695, %v1326_v4  ;;  %v1348_v16 = vmul.f32 1.442695, %v1328_v6  ;;  %v1338_v31 = vsub.f32 %v1285_v19, %v1308_v2  ;;  %v2769_v40 = vpop.f32.mrf.mxu0 }
 0x28d   :  { %v1352_v27 = vmul.f32 1.442695, %v1330_v7  ;;  %v1356_v36 = vmul.f32 1.442695, %v1332_v10  ;;  %v1350_v24 = vmul.f32 1.442695, %v1329_v32  ;;  %v1339_v35 = vsub.f32 %v2747_v51, %v1323_v3 }
 0x28e   :  { %2296 = vpow2.f32 %v1340_v9  ;;  %v1360_v12 = vmul.f32 1.442695, %v1334_v18  ;;  %v1342_v37 = vmul.f32 1.442695, %v1325_v29  ;;  %v1364_v39 = vmul.f32 1.442695, %v1336_v20  ;;  %v2773_v43 = vpop.f32.mrf.mxu0 }
 0x28f   :  { %2298 = vpow2.f32 %v1344_v11  ;;  %v1354_v41 = vmul.f32 1.442695, %v1331_v13  ;;  %v1368_v17 = vmul.f32 1.442695, %v1338_v31  ;;  %v1358_v42 = vmul.f32 1.442695, %v1333_v26 }
 0x290   :  { %2300 = vpow2.f32 %v1348_v16  ;;  %v1362_v45 = vmul.f32 1.442695, %v1335_v38  ;;  %v1366_v46 = vmul.f32 1.442695, %v1337_v33  ;;  %v2776_v28 = vpop.f32.mrf.mxu0  ;;  %v1370_v49 = vmul.f32 1.442695, %v1339_v35 }
 0x291   :  { %2302 = vpow2.f32 %v1352_v27 }
 0x292   :  { %2304 = vpow2.f32 %v1346_v30  ;;  %v2783_v53 = vpop.f32.mrf.mxu0 }
 0x293   :  { %2306 = vpow2.f32 %v1356_v36 }
 0x294   :  { %2308 = vpow2.f32 %v1350_v24  ;;  %v1004_v62 = vpop.f32.mrf.mxu0 }
 0x295   :  { %2310 = vpow2.f32 %v1360_v12 }
 0x296   :  { %2312 = vpow2.f32 %v1342_v37  ;;  %v2796_v10 = vpop.f32.mrf.mxu0 }
 0x297   :  { %2314 = vpow2.f32 %v1364_v39 }
 0x298   :  { %2316 = vpow2.f32 %v1354_v41  ;;  %v1014_v13 = vpop.f32.mrf.mxu0 }
 0x299   :  { %2318 = vpow2.f32 %v1368_v17 }
 0x29a   :  { %2320 = vpow2.f32 %v1358_v42  ;;  %v2210_v39 = vpop.f32.mrf.mxu0 }
 0x29b   :  { %v2297_v15 = vpop.eup %2296  ;;  %2322 = vpow2.f32 %v1362_v45 }
 0x29c   :  { %v2299_v47 = vpop.eup %2298  ;;  %v1372_v34 = vsel %vm128_vm0, %v2297_v15, 0.0  ;;  %2324 = vpow2.f32 %v1366_v46  ;;  %v1024_v17 = vpop.f32.mrf.mxu0 }
 0x29d   :  { %v2301_v44 = vpop.eup %2300  ;;  %v1373_v50 = vsel %vm128_vm0, %v2299_v47, 0.0  ;;  %2326 = vpow2.f32 %v1370_v49 }
 0x29e   :  { %v2303_v48 = vpop.eup %2302  ;;  %v1374_v52 = vadd.f32 %v1373_v50, %v1372_v34  ;;  %v1375_v21 = vsel %vm128_vm0, %v2301_v44, 0.0  ;;  %v2213_v33 = vpop.f32.mrf.mxu0 }
 0x29f   :  { %v2780_v51 = vpop.eup %2304  ;;  %v1377_v19 = vsel %vm128_vm0, %v2303_v48, 0.0 }
 0x2a0   :  { %v2307_v54 = vpop.eup %2306  ;;  %v1376_v55 = vadd.f32 %v1375_v21, %v1374_v52  ;;  %v1388_v59 = vsel %vm128_vm0, %v2780_v51, 0.0  ;;  %v1034_v34 = vpop.f32.mrf.mxu0 }
 0x2a1   :  { %v2785_v56 = vpop.eup %2308  ;;  %v1379_v61 = vsel %vm128_vm0, %v2307_v54, 0.0 }
 0x2a2   :  { %v2311_v57 = vpop.eup %2310  ;;  %v1378_v58 = vadd.f32 %v1377_v19, %v1376_v55  ;;  %v1390_v6 = vsel %vm128_vm0, %v2785_v56, 0.0 }
 0x2a3   :  { %v2313_v60 = vpop.eup %2312  ;;  %v1381_v2 = vsel %vm128_vm0, %v2311_v57, 0.0 }
 0x2a4   :  { %v2315_v63 = vpop.eup %2314  ;;  %v1380_v25 = vadd.f32 %v1379_v61, %v1378_v58  ;;  %v1387_v0 = vsel %vm128_vm0, %v2313_v60, 0.0 }
 0x2a5   :  { %v2317_v1 = vpop.eup %2316  ;;  %v1389_v3 = vadd.f32 %v1388_v59, %v1387_v0  ;;  %v1383_v8 = vsel %vm128_vm0, %v2315_v63, 0.0  ;;  %v2216_v0 = vpop.f32.mrf.mxu0 }
 0x2a6   :  { %v2319_v23 = vpop.eup %2318  ;;  %v1382_v4 = vadd.f32 %v1381_v2, %v1380_v25  ;;  %v1392_v32 = vsel %vm128_vm0, %v2317_v1, 0.0 }
 0x2a7   :  { %v2321_v7 = vpop.eup %2320  ;;  %v1391_v9 = vadd.f32 %v1390_v6, %v1389_v3  ;;  %v1385_v18 = vsel %vm128_vm0, %v2319_v23, 0.0 }
 0x2a8   :  { %v1384_v11 = vadd.f32 %v1383_v8, %v1382_v4  ;;  %v2323_v16 = vpop.eup %2322  ;;  %v1394_v29 = vsel %vm128_vm0, %v2321_v7, 0.0 }
 0x2a9   :  { %v1393_v27 = vadd.f32 %v1392_v32, %v1391_v9  ;;  %v2325_v20 = vpop.eup %2324  ;;  %v1396_v24 = vsel %vm128_vm0, %v2323_v16, 0.0 }
 0x2aa   :  { %v1386_v30 = vadd.f32 %v1385_v18, %v1384_v11  ;;  %v2802_v31 = vpop.eup %2326  ;;  %v1398_v26 = vsel %vm128_vm0, %v2325_v20, 0.0 }
 0x2ab   :  { %v1395_v36 = vadd.f32 %v1394_v29, %v1393_v27  ;;  %v1400_v38 = vsel %vm128_vm0, %v2802_v31, 0.0 }
 0x2ac   :  { %2328 = vrcp.f32 %v1386_v30 }
 0x2ad   :  { %v1397_v12 = vadd.f32 %v1396_v24, %v1395_v36 }
 0x2af   :  { %v1399_v37 = vadd.f32 %v1398_v26, %v1397_v12 }
 0x2b1   :  { %v1401_v41 = vadd.f32 %v1400_v38, %v1399_v37 }
 0x2b3   :  { %2330 = vrcp.f32 %v1401_v41 }
 0x2b9   :  { %v2329_v42 = vpop.eup %2328 }
 0x2ba   :  { %v1403_v35 = vmul.f32 %v2329_v42, %v2297_v15  ;;  %v1406_v45 = vmul.f32 %v2329_v42, %v2299_v47  ;;  %v1408_v46 = vmul.f32 %v2329_v42, %v2301_v44  ;;  %v1410_v49 = vmul.f32 %v2329_v42, %v2303_v48 }
 0x2bb   :  { %v1412_v55 = vmul.f32 %v2329_v42, %v2307_v54  ;;  %v1414_v61 = vmul.f32 %v2329_v42, %v2311_v57  ;;  %v1416_v48 = vmul.f32 %v2329_v42, %v2315_v63  ;;  %v1418_v2 = vmul.f32 %v2329_v42, %v2319_v23  ;;  %v1044_v63 = vpop.f32.mrf.mxu0 }
 0x2bc   :  { %v1420_v50 = vmul.f32 %v1403_v35, %v2761_v14  ;;  %v1422_v52 = vmul.f32 %v1406_v45, %v2769_v40  ;;  %v1424_v21 = vmul.f32 %v1408_v46, %v2776_v28  ;;  %v1426_v59 = vmul.f32 %v1410_v49, %v1004_v62 }
 0x2bd   :  { %v1428_v44 = vmul.f32 %v1412_v55, %v1014_v13  ;;  %v1430_v62 = vmul.f32 %v1414_v61, %v1024_v17  ;;  %v1434_v27 = vmul.f32 %v1418_v2, %v1044_v63 }
 0x2be   :  { %v1436_v19 = vsel %vm128_vm0, %v1420_v50, 0.0  ;;  %v1437_v58 = vsel %vm128_vm0, %v1422_v52, 0.0  ;;  %v1439_v47 = vsel %vm128_vm0, %v1424_v21, 0.0  ;;  %v1441_v4 = vsel %vm128_vm0, %v1426_v59, 0.0  ;;  %v2340_v21 = vld [vmem:[%s2902_s0] sm:$0xff] }
 0x2bf   :  { %v1438_v25 = vadd.f32 %v1437_v58, %v1436_v19  ;;  %v1449_v37 = vsel %vm128_vm0, %v1434_v27, 0.0  ;;  %v2341_v58 = vld [vmem:[%s2902_s0 + $0x8] sm:$0xff]  ;;  %s1812_s0 = sshll.u32 %s2389_s8, 4  ;;  %s1813_s0 = int_to_ptr.vmem [resolvable:$true] %s1812_s0 }
 0x2c0   :  { %v2331_v15 = vpop.eup %2330  ;;  %s2362_s9 = scalar_lea.vmem %s1813_s0, 256  ;;  %p2367_p6 = scmp.lt.s32.totalorder %s1813_s0, %s1813_s0 }
 0x2c1   :  { %v1405_v14 = vmul.f32 %v2331_v15, %v2313_v60  ;;  %v1407_v40 = vmul.f32 %v2331_v15, %v2780_v51  ;;  %v1409_v28 = vmul.f32 %v2331_v15, %v2785_v56  ;;  %v1440_v54 = vadd.f32 %v1439_v47, %v1438_v25  ;;  %p2363_p5 = scmp.ne.s32.totalorder %s1813_s0, %s2362_s9  ;;  %p2368_p7 = scmp.lt.s32.totalorder %s2362_s9, %s2362_s9 }
 0x2c2   :  { %v1411_v3 = vmul.f32 %v2331_v15, %v2317_v1  ;;  %v1413_v6 = vmul.f32 %v2331_v15, %v2321_v7  ;;  %v1443_v60 = vsel %vm128_vm0, %v1428_v44, 0.0  ;;  %v1415_v23 = vmul.f32 %v2331_v15, %v2323_v16 }
 0x2c3   :  { %v1421_v57 = vmul.f32 %v2759_v5, %v1405_v14  ;;  %v1423_v8 = vmul.f32 %v2765_v22, %v1407_v40  ;;  %v1425_v9 = vmul.f32 %v2773_v43, %v1409_v28  ;;  %v1442_v11 = vadd.f32 %v1441_v4, %v1440_v54  ;;  %v107_v54 = vld [vmem:[#allocation2 + $0xf0] sm:$0xff]  ;;  %p2369_p8 = por %p2368_p7, %p2367_p6 }
 0x2c4   :  { %v1432_v51 = vmul.f32 %v1416_v48, %v1034_v34  ;;  %v1427_v32 = vmul.f32 %v2783_v53, %v1411_v3  ;;  %v1445_v5 = vsel %vm128_vm0, %v1430_v62, 0.0  ;;  %v1429_v43 = vmul.f32 %v2796_v10, %v1413_v6  ;;  %v106_v3 = vld [vmem:[#allocation2 + $0xb0] sm:$0xff]  ;;  %2260 = vmatprep.subr.mxu0 %v107_v54  ;;  %v79_v62 = vld [vmem:[%s2905_s3 + $0x38] sm:$0xff] }
 0x2c5   :  { %v1451_v56 = vsel %vm128_vm0, %v1421_v57, 0.0  ;;  %v1452_v1 = vsel %vm128_vm0, %v1423_v8, 0.0  ;;  %v1444_v7 = vadd.f32 %v1443_v60, %v1442_v11  ;;  %v1454_v22 = vsel %vm128_vm0, %v1425_v9, 0.0  ;;  %v105_v4 = vld [vmem:[#allocation2 + $0x70] sm:$0xff]  ;;  %p2370_p9 = pnand %p2369_p8, %p2363_p5 }
 0x2c6   :  { %v1453_v18 = vadd.f32 %v1452_v1, %v1451_v56  ;;  %v1417_v29 = vmul.f32 %v2331_v15, %v2325_v20  ;;  %v1447_v16 = vsel %vm128_vm0, %v1432_v51, 0.0  ;;  %v1456_v13 = vsel %vm128_vm0, %v1427_v32, 0.0  ;;  %v104_v6 = vld [vmem:[#allocation2 + $0x30] sm:$0xff]  ;;  %v1918_v51 = vld [vmem:[%s2907_s5 + $0x6] ss:$0 sm:$0xff] }
 0x2c7   :  { %v1446_v30 = vadd.f32 %v1445_v5, %v1444_v7  ;;  %v1431_v24 = vmul.f32 %v2210_v39, %v1415_v23  ;;  %v1419_v53 = vmul.f32 %v2331_v15, %v2802_v31  ;;  %v1458_v38 = vsel %vm128_vm0, %v1429_v43, 0.0  ;;  %v1919_v1 = vld [vmem:[%s2907_s5 + $0x7] ss:$0 sm:$0xff]  ;;  %v78_v43 = vld [vmem:[%s2905_s3 + $0x30] sm:$0xff] }
 0x2c8   :  { %v1455_v36 = vadd.f32 %v1454_v22, %v1453_v18  ;;  %v1433_v41 = vmul.f32 %v2213_v33, %v1417_v29  ;;  %v1915_v33 = vld [vmem:[%s2907_s5 + $0x5] ss:$0 sm:$0xff] }
 0x2c9   :  { %v1448_v12 = vadd.f32 %v1447_v16, %v1446_v30  ;;  %v1460_v10 = vsel %vm128_vm0, %v1431_v24, 0.0  ;;  %v1435_v20 = vmul.f32 %v2216_v0, %v1419_v53  ;;  %v77_v30 = vld [vmem:[%s2905_s3 + $0x28] sm:$0xff]  ;;  %v76_v29 = vld [vmem:[%s2905_s3 + $0x20] sm:$0xff]  ;;  %v74_v16 = vld [vmem:[%s2905_s3 + $0x10] sm:$0xff] }
 0x2ca   :  { %v1457_v26 = vadd.f32 %v1456_v13, %v1455_v36  ;;  %v1462_v45 = vsel %vm128_vm0, %v1433_v41, 0.0  ;;  %v75_v36 = vld [vmem:[%s2905_s3 + $0x18] sm:$0xff]  ;;  %v73_v13 = vld [vmem:[%s2905_s3 + $0x8] sm:$0xff]  ;;  %v72_v24 = vld [vmem:[%s2905_s3] sm:$0xff] }
 0x2cb   :  { %v1450_v17 = vadd.f32 %v1449_v37, %v1448_v12  ;;  %v1464_v46 = vsel %vm128_vm0, %v1435_v20, 0.0  ;;  %v1920_v12 = vld [vmem:[%s2907_s5 + $0x8] ss:$0 sm:$0xff] }
 0x2cc   :  { %v1459_v42 = vadd.f32 %v1458_v38, %v1457_v26 }
 0x2cd   :  { %2257 = vmatprep.mubr.msk.f32.mxu0 %vm128_vm0, %v1450_v17 }
 0x2ce   :  { %v1461_v35 = vadd.f32 %v1460_v10, %v1459_v42  ;;  %v1923_v42 = vld [vmem:[%s2907_s5 + $0x9] ss:$0 sm:$0xff] }
 0x2d0   :  { %v1463_v39 = vadd.f32 %v1462_v45, %v1461_v35 }
 0x2d2   :  { %v1465_v31 = vadd.f32 %v1464_v46, %v1463_v39 }
 0x2d4   :  { %2258 = vmatmul.mubr.msk.f32.vlgmr.msra.gmra.mxu0 %vm128_vm0, %v1465_v31 }
 0x2d5   :  { %2261 = vmatpush3.msra.mxu0 %v107_v54  ;;  %v1927_v54 = vld [vmem:[%s2907_s5 + $0xb] ss:$0 sm:$0xff] }
 0x2d6   :  { %2262 = vmatprep.subr.mxu0 %v106_v3 }
 0x2d7   :  { %2263 = vmatpush3.msra.mxu0 %v106_v3 }
 0x2d8   :  { %2264 = vmatprep.subr.mxu0 %v105_v4 }
 0x2d9   :  { %2265 = vmatpush3.msra.mxu0 %v105_v4 }
 0x2da   :  { %2266 = vmatprep.subr.mxu0 %v104_v6 }
 0x2db   :  { %2267 = vmatpush3.msra.mxu0 %v104_v6 }
 0x2dc   :  { %2271 = vmatprep.subr.mxu0 %v79_v62 }
 0x394   :  { %v2259_v49 = vpop.f32.mrf.mxu0 }
 0x395   :  { %v1548_v50 = vadd.f32 %v2259_v49, %v1915_v33 }
 0x396   :  { %v1542_v34 = vpop.f32.mrf.mxu0 }
 0x397   :  { %v1543_v52 = vadd.f32 %v1915_v33, %v1542_v34  ;;  %v1552_v59 = vadd.f32 %v2341_v58, %v1548_v50 }
 0x399   :  { %v1551_v55 = vadd.f32 %v2340_v21, %v1543_v52  ;;  %v1556_v61 = vsel %vm128_vm0, %v1552_v59, 0.0 }
 0x39b   :  { %v1553_v19 = vsel %vm128_vm0, %v1551_v55, 0.0 }
 0x39c   :  { %1554 = vadd.xlane.f32.xlu0 %v1553_v19 }
 0x3a0   :  { %1557 = vadd.xlane.f32.xlu0 %v1556_v61 }
 0x425   :  { %v1555_v25 = vpop.xlane.xlu0 %1554 }
 0x426   :  { %v1560_v0 = vmul.f32 0.03125, %v1555_v25 }
 0x428   :  { %v1562_v15 = vsub.f32 %v1551_v55, %v1560_v0 }
 0x429   :  { %v1558_v47 = vpop.xlane.xlu0 %1557 }
 0x42a   :  { %v1561_v44 = vmul.f32 0.03125, %v1558_v47  ;;  %v1564_v48 = vmul.f32 %v1562_v15, %v1562_v15 }
 0x42c   :  { %v1563_v2 = vsub.f32 %v1552_v59, %v1561_v44  ;;  %v1566_v14 = vsel %vm128_vm0, %v1564_v48, 0.0 }
 0x42d   :  { %1567 = vadd.xlane.f32.xlu1 %v1566_v14  ;;  %v1926_v14 = vld [vmem:[%s2907_s5 + $0xa] ss:$0 sm:$0xff] }
 0x42e   :  { %v1565_v40 = vmul.f32 %v1563_v2, %v1563_v2 }
 0x430   :  { %v1569_v28 = vsel %vm128_vm0, %v1565_v40, 0.0 }
 0x431   :  { %1570 = vadd.xlane.f32.xlu1 %v1569_v28 }
 0x4b6   :  { %v1568_v57 = vpop.xlane.xlu1 %1567 }
 0x4b7   :  { %v1572_v8 = vmul.f32 0.03125, %v1568_v57 }
 0x4b9   :  { %v1574_v9 = vadd.f32 1e-05, %v1572_v8 }
 0x4ba   :  { %v1571_v11 = vpop.xlane.xlu1 %1570 }
 0x4bb   :  { %2332 = vrsqrt.f32 %v1574_v9  ;;  %v1573_v63 = vmul.f32 0.03125, %v1571_v11 }
 0x4bd   :  { %v1575_v60 = vadd.f32 1e-05, %v1573_v63 }
 0x4bf   :  { %2334 = vrsqrt.f32 %v1575_v60 }
 0x4c8   :  { %v2333_v23 = vpop.eup %2332 }
 0x4c9   :  { %v1578_v56 = vmul.f32 %v2333_v23, %v1562_v15 }
 0x4cb   :  { %v1584_v32 = vmul.f32 %v1918_v51, %v1578_v56 }
 0x4cc   :  { %v2335_v7 = vpop.eup %2334 }
 0x4cd   :  { %v1579_v18 = vmul.f32 %v2335_v7, %v1563_v2  ;;  %v1590_v5 = vadd.f32 %v1919_v1, %v1584_v32 }
 0x4cf   :  { %v1585_v27 = vmul.f32 %v1918_v51, %v1579_v18  ;;  %2268 = vmatprep.mubr.msk.f32.mxu0 %vm128_vm0, %v1590_v5 }
 0x4d1   :  { %v1591_v22 = vadd.f32 %v1919_v1, %v1585_v27 }
 0x4d3   :  { %2269 = vmatmul.mubr.msk.f32.vlgmr.msra.gmra.mxu0 %vm128_vm0, %v1591_v22 }
 0x4d4   :  { %2272 = vmatpush3.msra.mxu0 %v79_v62 }
 0x4d5   :  { %2273 = vmatprep.subr.mxu0 %v78_v43 }
 0x4d6   :  { %2274 = vmatpush3.msra.mxu0 %v78_v43 }
 0x4d7   :  { %2275 = vmatprep.subr.mxu0 %v77_v30 }
 0x4d8   :  { %2276 = vmatpush3.msra.mxu0 %v77_v30 }
 0x4d9   :  { %2277 = vmatprep.subr.mxu0 %v76_v29 }
 0x4da   :  { %2278 = vmatpush3.msra.mxu0 %v76_v29 }
 0x4db   :  { %2279 = vmatprep.subr.mxu0 %v75_v36 }
 0x4dc   :  { %2280 = vmatpush3.msra.mxu0 %v75_v36 }
 0x4dd   :  { %2281 = vmatprep.subr.mxu0 %v74_v16 }
 0x4de   :  { %2282 = vmatpush3.msra.mxu0 %v74_v16 }
 0x4df   :  { %2283 = vmatprep.subr.mxu0 %v73_v13 }
 0x4e0   :  { %2284 = vmatpush3.msra.mxu0 %v73_v13 }
 0x4e1   :  { %2285 = vmatprep.subr.mxu0 %v72_v24 }
 0x4e2   :  { %2286 = vmatpush3.msra.mxu0 %v72_v24 }
 0x593   :  { %v2270_v53 = vpop.f32.mrf.mxu0 }
 0x594   :  { %v1674_v26 = vadd.f32 %v2270_v53, %v1920_v12 }
 0x595   :  { %v1668_v37 = vpop.f32.mrf.mxu0 }
 0x596   :  { %v1669_v38 = vadd.f32 %v1920_v12, %v1668_v37  ;;  %v1678_v17 = vmax.f32 %v1674_v26, 0.0 }
 0x598   :  { %v1677_v41 = vmax.f32 %v1669_v38, 0.0 }
 0x59a   :  { %2287 = vmatprep.mubr.msk.f32.mxu0 %vm1683_vm2, %v1677_v41 }
 0x59b   :  { %2288 = vmatmul.mubr.msk.f32.vlgmr.msra.gmra.mxu0 %vm1683_vm2, %v1678_v17 }
 0x65b   :  { %v2289_v10 = vpop.f32.mrf.mxu0 }
 0x65c   :  { %v1762_v20 = vadd.f32 %v2289_v10, %v1923_v42 }
 0x65d   :  { %v1756_v35 = vpop.f32.mrf.mxu0 }
 0x65e   :  { %v1757_v45 = vadd.f32 %v1923_v42, %v1756_v35  ;;  %v1766_v39 = vadd.f32 %v1762_v20, %v1591_v22 }
 0x660   :  { %v1770_v46 = vsel %vm128_vm0, %v1766_v39, 0.0  ;;  %v1765_v31 = vadd.f32 %v1757_v45, %v1590_v5 }
 0x661   :  { %1771 = vadd.xlane.f32.xlu1 %v1770_v46 }
 0x662   :  { %v1767_v49 = vsel %vm128_vm0, %v1765_v31, 0.0 }
 0x663   :  { %1768 = vadd.xlane.f32.xlu0 %v1767_v49 }
 0x6ea   :  { %v1772_v33 = vpop.xlane.xlu1 %1771 }
 0x6eb   :  { %v1774_v34 = vmul.f32 0.03125, %v1772_v33 }
 0x6ec   :  { %v1769_v50 = vpop.xlane.xlu0 %1768 }
 0x6ed   :  { %v1776_v52 = vsub.f32 %v1766_v39, %v1774_v34  ;;  %v1773_v21 = vmul.f32 0.03125, %v1769_v50 }
 0x6ef   :  { %v1775_v55 = vsub.f32 %v1765_v31, %v1773_v21  ;;  %v1778_v19 = vmul.f32 %v1776_v52, %v1776_v52 }
 0x6f1   :  { %v1782_v58 = vsel %vm128_vm0, %v1778_v19, 0.0  ;;  %v1777_v59 = vmul.f32 %v1775_v55, %v1775_v55 }
 0x6f2   :  { %1783 = vadd.xlane.f32.xlu1 %v1782_v58 }
 0x6f3   :  { %v1779_v61 = vsel %vm128_vm0, %v1777_v59, 0.0 }
 0x6f4   :  { %1780 = vadd.xlane.f32.xlu0 %v1779_v61 }
 0x77b   :  { %v1784_v25 = vpop.xlane.xlu1 %1783 }
 0x77c   :  { %v1786_v0 = vmul.f32 0.03125, %v1784_v25 }
 0x77d   :  { %v1781_v15 = vpop.xlane.xlu0 %1780 }
 0x77e   :  { %v1788_v47 = vadd.f32 1e-05, %v1786_v0  ;;  %v1785_v44 = vmul.f32 0.03125, %v1781_v15 }
 0x780   :  { %2336 = vrsqrt.f32 %v1788_v47  ;;  %v1787_v48 = vadd.f32 1e-05, %v1785_v44 }
 0x782   :  { %2338 = vrsqrt.f32 %v1787_v48 }
 0x78d   :  { %v2337_v2 = vpop.eup %2336 }
 0x78e   :  { %v1792_v40 = vmul.f32 %v2337_v2, %v1776_v52 }
 0x78f   :  { %v2339_v28 = vpop.eup %2338 }
 0x790   :  { %v1791_v3 = vmul.f32 %v2339_v28, %v1775_v55  ;;  %v1798_v4 = vmul.f32 %v1926_v14, %v1792_v40 }
 0x792   :  { %v1797_v6 = vmul.f32 %v1926_v14, %v1791_v3  ;;  %v1804_v62 = vadd.f32 %v1927_v54, %v1798_v4 }
 0x794   :  { %v1803_v57 = vadd.f32 %v1927_v54, %v1797_v6  ;;  %1806 = vst.msk [vmem:[#allocation5 + $0x8] sm:$0xff] %vm128_vm0, %v1804_v62 }
 0x796   :  { %1805 = vst.msk [vmem:[#allocation5] sm:$0xff] %vm128_vm0, %v1803_v57 }
 0x797   :  { %2373 = shalt.err (!%p2370_p9)
}
 0x798   :  { %s2390_s5 = smov 128   ;;  %s2391_s10 = smov 8  }
 0x799   :  { %1818 = dma.vmem_to_hbm [thread:$0]  %s1813_s0, 256, %s2908_s6, [#allocation4], %s2390_s5, %s2390_s5, %s2391_s10  }
 0x79a   :  { %2384 = dma.done.wait [#allocation4], 256  }
 0x79b   :  { %2385 = vsyncadd [#allocation4], 4294967040 }
 0x79c   :  { %1822 = vsyncpa [#allocation3], 1 }
 0x79d   :  { %1823 = vsyncpa [#allocation4], 1 }

</bundles_post_ra>
